<compile_context>
chip_gen: v5e
topology: v5e:2x2
jax: 0.10.0
libtpu: 0.0.40
codegen_flags: <defaults>
</compile_context>

<pallas_src>
import math

import jax
import jax.numpy as jnp
from jax.experimental import pallas as pl
from jax.experimental.pallas import tpu as pltpu

# ----------------------------- model config ---------------------------------
VOCAB = 100
TYPE_VOCAB = 2
MAX_POS = 16
HIDDEN = 32          # small synthetic stand-in for bert.config.hidden_size
NUM_HEADS = 4
HEAD_DIM = HIDDEN // NUM_HEADS
NUM_LAYERS = 2
INTERMEDIATE = 64
OUT_DIM = 1          # BertClsToReg: fc = nn.Linear(hidden_size, 1)
OUT_PAD = 128        # lane-dense padded head width (real column is 0)
LN_EPS = 1e-12
MASK_NEG = -10000.0  # HF BERT additive mask value


# ----------------------------- kernel helpers --------------------------------
def _layernorm(x, gamma, beta):
    mean = jnp.mean(x, axis=-1, keepdims=True)
    var = jnp.mean((x - mean) ** 2, axis=-1, keepdims=True)
    inv = jax.lax.rsqrt(var + LN_EPS)
    return (x - mean) * inv * gamma + beta


def _gelu(x):
    # TODO(synk): HF BERT's default 'gelu' is the exact erf form; tanh approx used here.
    c = math.sqrt(2.0 / math.pi)
    return 0.5 * x * (1.0 + jnp.tanh(c * (x + 0.044715 * x * x * x)))


# ----------------------------- fused Pallas kernel ---------------------------
def fused_bert_kernel(emb_ref, mask_ref, embg_ref, embb_ref,
                      wqkv_ref, bqkv_ref, wo_ref, bo_ref,
                      ln1g_ref, ln1b_ref, w1_ref, b1_ref,
                      w2_ref, b2_ref, ln2g_ref, ln2b_ref,
                      fcw_ref, fcb_ref,
                      o_ref,
                      h_sc, madd_sc):
    l = pl.program_id(0)
    B, S, H = emb_ref.shape
    nh, hd = NUM_HEADS, HEAD_DIM

    # ---- prologue (l == 0): embedding LayerNorm + hoisted additive mask ----
    @pl.when(l == 0)
    def _():
        emb = emb_ref[...].reshape(B * S, H)
        h_sc[...] = _layernorm(emb, embg_ref[...], embb_ref[...])
        neg = (1.0 - mask_ref[...]) * MASK_NEG                      # (B, S)
        madd_sc[...] = jnp.broadcast_to(
            neg[:, None, None, :], (B, nh, 1, S)).reshape(B * nh, 1, S)

    x2 = h_sc[...]                                 # (B*S, H) f32, VMEM-resident

    # ---- fused QKV projection: one MXU matmul (bf16 operands, f32 accum) ----
    x2b = x2.astype(jnp.bfloat16)
    qkv = jnp.dot(x2b, wqkv_ref[...].astype(jnp.bfloat16),
                  preferred_element_type=jnp.float32) + bqkv_ref[...]
    q = qkv[:, 0 * H:1 * H]
    k = qkv[:, 1 * H:2 * H]
    v = qkv[:, 2 * H:3 * H]

    # ---- head-batched attention: fold heads into the batch dimension ----
    def to_heads(t):                                # (B*S, H) -> (B*nh, S, hd)
        return (t.reshape(B, S, nh, hd)
                 .transpose(0, 2, 1, 3)
                 .reshape(B * nh, S, hd)
                 .astype(jnp.bfloat16))

    qh, kh, vh = to_heads(q), to_heads(k), to_heads(v)
    scale = 1.0 / math.sqrt(hd)
    sc = jnp.einsum('bqd,bkd->bqk', qh, kh,
                    preferred_element_type=jnp.float32) * scale
    sc = sc + madd_sc[...]                          # (B*nh, S, S) + (B*nh, 1, S)
    m = jnp.max(sc, axis=-1, keepdims=True)
    e = jnp.exp(sc - m)
    p = e * pl.reciprocal(jnp.sum(e, axis=-1, keepdims=True), approx=True)
    ctx = jnp.einsum('bqk,bkd->bqd', p.astype(jnp.bfloat16), vh,
                     preferred_element_type=jnp.float32)
    ctx = (ctx.reshape(B, nh, S, hd)
              .transpose(0, 2, 1, 3)
              .reshape(B * S, H))

    # ---- attention output projection + residual + LayerNorm ----
    attn = jnp.dot(ctx.astype(jnp.bfloat16), wo_ref[...].astype(jnp.bfloat16),
                   preferred_element_type=jnp.float32) + bo_ref[...]
    h1 = _layernorm(x2 + attn, ln1g_ref[...], ln1b_ref[...])

    # ---- feed-forward (GELU) + residual + LayerNorm ----
    ff = _gelu(jnp.dot(h1.astype(jnp.bfloat16), w1_ref[...].astype(jnp.bfloat16),
                       preferred_element_type=jnp.float32) + b1_ref[...])
    ff = jnp.dot(ff.astype(jnp.bfloat16), w2_ref[...].astype(jnp.bfloat16),
                 preferred_element_type=jnp.float32) + b2_ref[...]
    out = _layernorm(h1 + ff, ln2g_ref[...], ln2b_ref[...])
    h_sc[...] = out                                 # carry to next layer

    # ---- epilogue (last layer): regression head sigmoid(fc(.)) ----
    @pl.when(l == NUM_LAYERS - 1)
    def _():
        # Apply the (zero-padded, lane-dense) head to all positions; the
        # wrapper selects the CLS row (s == 0) and the real column 0.
        # Dropout(0.5) is identity at inference time.
        logit = jnp.dot(out, fcw_ref[...],
                        preferred_element_type=jnp.float32) + fcb_ref[...]
        o_ref[...] = 1.0 / (1.0 + jnp.exp(-logit))  # sigmoid


# ----------------------------- parameters ------------------------------------
def init_params(key):
    keys = iter(jax.random.split(key, 64))

    def nrm(shape):
        return (0.02 * jax.random.normal(next(keys), shape)).astype(jnp.float32)

    zeros = lambda s: jnp.zeros(s, jnp.float32)
    ones = lambda s: jnp.ones(s, jnp.float32)

    L, H, H3, IN = NUM_LAYERS, HIDDEN, 3 * HIDDEN, INTERMEDIATE

    fc_w = jnp.zeros((H, OUT_PAD), jnp.float32).at[:, :OUT_DIM].set(
        nrm((H, OUT_DIM)))
    fc_b = jnp.zeros((1, OUT_PAD), jnp.float32)

    return {
        'word_emb': nrm((VOCAB, H)),
        'pos_emb': nrm((MAX_POS, H)),
        'type_emb': nrm((TYPE_VOCAB, H)),
        'emb_ln_g': ones((1, H)),
        'emb_ln_b': zeros((1, H)),
        # per-layer weights stacked along a leading layer axis; Q/K/V fused.
        'wqkv': nrm((L, H, H3)), 'bqkv': zeros((L, 1, H3)),
        'wo': nrm((L, H, H)), 'bo': zeros((L, 1, H)),
        'ln1_g': ones((L, 1, H)), 'ln1_b': zeros((L, 1, H)),
        'w1': nrm((L, H, IN)), 'b1': zeros((L, 1, IN)),
        'w2': nrm((L, IN, H)), 'b2': zeros((L, 1, H)),
        'ln2_g': ones((L, 1, H)), 'ln2_b': zeros((L, 1, H)),
        # regression head Linear(H, 1), zero-padded to a 128-lane slab.
        'fc_w': fc_w, 'fc_b': fc_b,
    }


# ----------------------------- forward (BertClsToReg) ------------------------
def bert_cls_to_reg_forward(params, x):
    """x: int32 (B, 3, S) = [input_ids; attention_mask; token_type_ids]."""
    input_ids = x[:, 0, :]
    attention_mask = x[:, 1, :].astype(jnp.float32)
    token_type_ids = x[:, 2, :]
    B, S = input_ids.shape
    H, H3, IN = HIDDEN, 3 * HIDDEN, INTERMEDIATE

    # Embedding-table gathers stay in plain JAX (glue).
    emb = (params['word_emb'][input_ids]
           + params['pos_emb'][:S][None, :, :]
           + params['type_emb'][token_type_ids]).astype(jnp.float32)

    rep2 = lambda l: (0, 0)
    rep3 = lambda l: (0, 0, 0)
    lay3 = lambda l: (l, 0, 0)

    in_specs = [
        pl.BlockSpec((B, S, H), rep3),              # emb
        pl.BlockSpec((B, S), rep2),                 # attention mask
        pl.BlockSpec((1, H), rep2),                 # emb LN gamma
        pl.BlockSpec((1, H), rep2),                 # emb LN beta
        pl.BlockSpec((None, H, H3), lay3),          # wqkv (L, H, 3H)
        pl.BlockSpec((None, 1, H3), lay3),          # bqkv
        pl.BlockSpec((None, H, H), lay3),           # wo
        pl.BlockSpec((None, 1, H), lay3),           # bo
        pl.BlockSpec((None, 1, H), lay3),           # ln1 gamma
        pl.BlockSpec((None, 1, H), lay3),           # ln1 beta
        pl.BlockSpec((None, H, IN), lay3),          # w1
        pl.BlockSpec((None, 1, IN), lay3),          # b1
        pl.BlockSpec((None, IN, H), lay3),          # w2
        pl.BlockSpec((None, 1, H), lay3),           # b2
        pl.BlockSpec((None, 1, H), lay3),           # ln2 gamma
        pl.BlockSpec((None, 1, H), lay3),           # ln2 beta
        pl.BlockSpec((H, OUT_PAD), rep2),           # fc_w (padded)
        pl.BlockSpec((1, OUT_PAD), rep2),           # fc_b (padded)
    ]
    out_specs = pl.BlockSpec((B * S, OUT_PAD), rep2)

    out_pad = pl.pallas_call(
        fused_bert_kernel,
        out_shape=jax.ShapeDtypeStruct((B * S, OUT_PAD), jnp.float32),
        grid=(NUM_LAYERS,),
        in_specs=in_specs,
        out_specs=out_specs,
        scratch_shapes=[
            pltpu.VMEM((B * S, H), jnp.float32),                 # resident activation
            pltpu.VMEM((B * NUM_HEADS, 1, S), jnp.float32),      # additive mask
        ],
        compiler_params=pltpu.CompilerParams(
            dimension_semantics=("arbitrary",)),                 # layer axis is sequential
    )(emb, attention_mask,
      params['emb_ln_g'], params['emb_ln_b'],
      params['wqkv'], params['bqkv'], params['wo'], params['bo'],
      params['ln1_g'], params['ln1_b'], params['w1'], params['b1'],
      params['w2'], params['b2'], params['ln2_g'], params['ln2_b'],
      params['fc_w'], params['fc_b'])

    # CLS token = sequence position 0 of each example; real head column is 0.
    logit = out_pad[0::S, :OUT_DIM]                 # (B, 1)
    return logit


# ----------------------------- main -------------------------------------------
if __name__ == "__main__":
    B, S = 2, 8
    key = jax.random.PRNGKey(0)
    k_param, k_ids, k_type = jax.random.split(key, 3)

    params = init_params(k_param)

    input_ids = jax.random.randint(k_ids, (B, S), 0, VOCAB, dtype=jnp.int32)
    attention_mask = jnp.ones((B, S), jnp.int32).at[1, S - 2:].set(0)
    token_type_ids = jax.random.randint(k_type, (B, S), 0, TYPE_VOCAB,
                                        dtype=jnp.int32)
    x = jnp.stack([input_ids, attention_mask, token_type_ids], axis=1)  # (B,3,S)

    logit = jax.jit(bert_cls_to_reg_forward)(params, x)
    logit = jax.block_until_ready(logit)

    assert logit.shape == (B, OUT_DIM)
    assert bool(jnp.all(jnp.isfinite(logit)))
    assert bool(jnp.all((logit >= 0.0) & (logit <= 1.0)))   # sigmoid range
    print("KERNEL_OK")
</pallas_src>

<mosaic_0001>
module attributes {stable_mosaic.version = 11 : i64} {
  func.func @fused_bert_kernel(%arg0: i32, %arg1: memref<2x8x32xf32, #tpu.memory_space<vmem>>, %arg2: memref<2x8xf32, #tpu.memory_space<vmem>>, %arg3: memref<1x32xf32, #tpu.memory_space<vmem>>, %arg4: memref<1x32xf32, #tpu.memory_space<vmem>>, %arg5: memref<1x32x96xf32, #tpu.memory_space<vmem>>, %arg6: memref<1x1x96xf32, #tpu.memory_space<vmem>>, %arg7: memref<1x32x32xf32, #tpu.memory_space<vmem>>, %arg8: memref<1x1x32xf32, #tpu.memory_space<vmem>>, %arg9: memref<1x1x32xf32, #tpu.memory_space<vmem>>, %arg10: memref<1x1x32xf32, #tpu.memory_space<vmem>>, %arg11: memref<1x32x64xf32, #tpu.memory_space<vmem>>, %arg12: memref<1x1x64xf32, #tpu.memory_space<vmem>>, %arg13: memref<1x64x32xf32, #tpu.memory_space<vmem>>, %arg14: memref<1x1x32xf32, #tpu.memory_space<vmem>>, %arg15: memref<1x1x32xf32, #tpu.memory_space<vmem>>, %arg16: memref<1x1x32xf32, #tpu.memory_space<vmem>>, %arg17: memref<32x128xf32, #tpu.memory_space<vmem>>, %arg18: memref<1x128xf32, #tpu.memory_space<vmem>>, %arg19: memref<16x128xf32, #tpu.memory_space<vmem>>, %arg20: memref<16x32xf32, #tpu.memory_space<vmem>>, %arg21: memref<8x1x8xf32, #tpu.memory_space<vmem>>) attributes {dimension_semantics = [#tpu.dimension_semantics<arbitrary>], iteration_bounds = array<i64: 2>, scalar_prefetch = 0 : i64, scratch_operands = 2 : i64, tpu.core_type = #tpu.core_type<tc>, window_params = [{pipeline_mode = #tpu.pipeline_mode<synchronous>, transform_indices = @transform_0, window_bounds = array<i64: 2, 8, 32>}, {pipeline_mode = #tpu.pipeline_mode<synchronous>, transform_indices = @transform_1, window_bounds = array<i64: 2, 8>}, {pipeline_mode = #tpu.pipeline_mode<synchronous>, transform_indices = @transform_2, window_bounds = array<i64: 1, 32>}, {pipeline_mode = #tpu.pipeline_mode<synchronous>, transform_indices = @transform_3, window_bounds = array<i64: 1, 32>}, {transform_indices = @transform_4, window_bounds = array<i64: 1, 32, 96>}, {transform_indices = @transform_5, window_bounds = array<i64: 1, 1, 96>}, {transform_indices = @transform_6, window_bounds = array<i64: 1, 32, 32>}, {transform_indices = @transform_7, window_bounds = array<i64: 1, 1, 32>}, {transform_indices = @transform_8, window_bounds = array<i64: 1, 1, 32>}, {transform_indices = @transform_9, window_bounds = array<i64: 1, 1, 32>}, {transform_indices = @transform_10, window_bounds = array<i64: 1, 32, 64>}, {transform_indices = @transform_11, window_bounds = array<i64: 1, 1, 64>}, {transform_indices = @transform_12, window_bounds = array<i64: 1, 64, 32>}, {transform_indices = @transform_13, window_bounds = array<i64: 1, 1, 32>}, {transform_indices = @transform_14, window_bounds = array<i64: 1, 1, 32>}, {transform_indices = @transform_15, window_bounds = array<i64: 1, 1, 32>}, {pipeline_mode = #tpu.pipeline_mode<synchronous>, transform_indices = @transform_16, window_bounds = array<i64: 32, 128>}, {pipeline_mode = #tpu.pipeline_mode<synchronous>, transform_indices = @transform_17, window_bounds = array<i64: 1, 128>}, {pipeline_mode = #tpu.pipeline_mode<synchronous>, transform_indices = @transform_18, window_bounds = array<i64: 16, 128>}]} {
    %c0_i32 = arith.constant 0 : i32
    %0 = arith.cmpi eq, %arg0, %c0_i32 : i32
    %1 = arith.extui %0 : i1 to i32
    %c0_i32_0 = arith.constant 0 : i32
    %2 = arith.cmpi ne, %1, %c0_i32_0 : i32
    scf.if %2 {
      %c0_66 = arith.constant 0 : index
      %c0_67 = arith.constant 0 : index
      %c0_68 = arith.constant 0 : index
      %147 = vector.load %arg1[%c0_66, %c0_67, %c0_68] : memref<2x8x32xf32, #tpu.memory_space<vmem>>, vector<2x8x32xf32>
      %148 = vector.shape_cast %147 : vector<2x8x32xf32> to vector<16x32xf32>
      %c0_69 = arith.constant 0 : index
      %c0_70 = arith.constant 0 : index
      %149 = vector.load %arg3[%c0_69, %c0_70] : memref<1x32xf32, #tpu.memory_space<vmem>>, vector<1x32xf32>
      %c0_71 = arith.constant 0 : index
      %c0_72 = arith.constant 0 : index
      %150 = vector.load %arg4[%c0_71, %c0_72] : memref<1x32xf32, #tpu.memory_space<vmem>>, vector<1x32xf32>
      %cst_73 = arith.constant dense<0.000000e+00> : vector<16xf32>
      %151 = vector.multi_reduction <add>, %148, %cst_73 [1] : vector<16x32xf32> to vector<16xf32>
      %152 = vector.shape_cast %151 : vector<16xf32> to vector<16x1xf32>
      %cst_74 = arith.constant 3.200000e+01 : f32
      %153 = vector.broadcast %cst_74 : f32 to vector<16x1xf32>
      %154 = arith.divf %152, %153 : vector<16x1xf32>
      %155 = vector.broadcast %154 : vector<16x1xf32> to vector<16x32xf32>
      %156 = arith.subf %148, %155 : vector<16x32xf32>
      %157 = arith.mulf %156, %156 : vector<16x32xf32>
      %cst_75 = arith.constant dense<0.000000e+00> : vector<16xf32>
      %158 = vector.multi_reduction <add>, %157, %cst_75 [1] : vector<16x32xf32> to vector<16xf32>
      %159 = vector.shape_cast %158 : vector<16xf32> to vector<16x1xf32>
      %cst_76 = arith.constant 3.200000e+01 : f32
      %160 = vector.broadcast %cst_76 : f32 to vector<16x1xf32>
      %161 = arith.divf %159, %160 : vector<16x1xf32>
      %cst_77 = arith.constant 9.99999996E-13 : f32
      %162 = vector.broadcast %cst_77 : f32 to vector<16x1xf32>
      %163 = arith.addf %161, %162 : vector<16x1xf32>
      %164 = math.rsqrt %163 : vector<16x1xf32>
      %165 = vector.broadcast %154 : vector<16x1xf32> to vector<16x32xf32>
      %166 = arith.subf %148, %165 : vector<16x32xf32>
      %167 = vector.broadcast %164 : vector<16x1xf32> to vector<16x32xf32>
      %168 = arith.mulf %166, %167 : vector<16x32xf32>
      %169 = vector.broadcast %149 : vector<1x32xf32> to vector<16x32xf32>
      %170 = arith.mulf %168, %169 : vector<16x32xf32>
      %171 = vector.broadcast %150 : vector<1x32xf32> to vector<16x32xf32>
      %172 = arith.addf %170, %171 : vector<16x32xf32>
      %c0_78 = arith.constant 0 : index
      %c0_79 = arith.constant 0 : index
      %173 = vector.load %arg20[%c0_78, %c0_79] : memref<16x32xf32, #tpu.memory_space<vmem>>, vector<16x32xf32>
      tpu.vector_store %arg20[%c0_78, %c0_79], %172 {strides = array<i32>} : memref<16x32xf32, #tpu.memory_space<vmem>>, vector<16x32xf32>,
      %c0_80 = arith.constant 0 : index
      %c0_81 = arith.constant 0 : index
      %174 = vector.load %arg2[%c0_80, %c0_81] : memref<2x8xf32, #tpu.memory_space<vmem>>, vector<2x8xf32>
      %cst_82 = arith.constant 1.000000e+00 : f32
      %175 = vector.broadcast %cst_82 : f32 to vector<2x8xf32>
      %176 = arith.subf %175, %174 : vector<2x8xf32>
      %cst_83 = arith.constant -1.000000e+04 : f32
      %177 = vector.broadcast %cst_83 : f32 to vector<2x8xf32>
      %178 = arith.mulf %176, %177 : vector<2x8xf32>
      %179 = vector.shape_cast %178 : vector<2x8xf32> to vector<2x1x1x8xf32>
      %180 = vector.shape_cast %179 : vector<2x1x1x8xf32> to vector<2x1x1x8xf32>
      %181 = vector.broadcast %180 : vector<2x1x1x8xf32> to vector<2x4x1x8xf32>
      %182 = vector.shape_cast %181 : vector<2x4x1x8xf32> to vector<8x1x8xf32>
      %c0_84 = arith.constant 0 : index
      %c0_85 = arith.constant 0 : index
      %c0_86 = arith.constant 0 : index
      %183 = vector.load %arg21[%c0_84, %c0_85, %c0_86] : memref<8x1x8xf32, #tpu.memory_space<vmem>>, vector<8x1x8xf32>
      tpu.vector_store %arg21[%c0_84, %c0_85, %c0_86], %182 {strides = array<i32>} : memref<8x1x8xf32, #tpu.memory_space<vmem>>, vector<8x1x8xf32>,
    } else {
    }
    %c0 = arith.constant 0 : index
    %c0_1 = arith.constant 0 : index
    %3 = vector.load %arg20[%c0, %c0_1] : memref<16x32xf32, #tpu.memory_space<vmem>>, vector<16x32xf32>
    %4 = arith.truncf %3 : vector<16x32xf32> to vector<16x32xbf16>
    %c0_2 = arith.constant 0 : index
    %c0_3 = arith.constant 0 : index
    %c0_4 = arith.constant 0 : index
    %5 = vector.load %arg5[%c0_2, %c0_3, %c0_4] : memref<1x32x96xf32, #tpu.memory_space<vmem>>, vector<1x32x96xf32>
    %6 = vector.shape_cast %5 : vector<1x32x96xf32> to vector<32x96xf32>
    %7 = arith.truncf %6 : vector<32x96xf32> to vector<32x96xbf16>
    %cst = arith.constant dense<0.000000e+00> : vector<16x96xf32>
    %8 = tpu.matmul %4, %7, %cst {dimension_numbers = #tpu.dot_dimension_numbers<[1], [0], [0], [1], [0, 0, 1, 1], [], []>} : vector<16x32xbf16>, vector<32x96xbf16>, vector<16x96xf32> -> vector<16x96xf32>
    %c0_5 = arith.constant 0 : index
    %c0_6 = arith.constant 0 : index
    %c0_7 = arith.constant 0 : index
    %9 = vector.load %arg6[%c0_5, %c0_6, %c0_7] : memref<1x1x96xf32, #tpu.memory_space<vmem>>, vector<1x1x96xf32>
    %10 = vector.shape_cast %9 : vector<1x1x96xf32> to vector<1x96xf32>
    %11 = vector.broadcast %10 : vector<1x96xf32> to vector<16x96xf32>
    %12 = arith.addf %8, %11 : vector<16x96xf32>
    %13 = vector.extract_strided_slice %12 {offsets = [0, 0], sizes = [16, 32], strides = [1, 1]} : vector<16x96xf32> to vector<16x32xf32>
    %14 = vector.extract_strided_slice %12 {offsets = [0, 32], sizes = [16, 32], strides = [1, 1]} : vector<16x96xf32> to vector<16x32xf32>
    %15 = vector.extract_strided_slice %12 {offsets = [0, 64], sizes = [16, 32], strides = [1, 1]} : vector<16x96xf32> to vector<16x32xf32>
    %16 = vector.shape_cast %13 : vector<16x32xf32> to vector<2x8x4x8xf32>
    %17 = tpu.transpose %16, [0, 2, 1, 3] : vector<2x8x4x8xf32> -> vector<2x4x8x8xf32>
    %18 = vector.shape_cast %17 : vector<2x4x8x8xf32> to vector<8x8x8xf32>
    %19 = arith.truncf %18 : vector<8x8x8xf32> to vector<8x8x8xbf16>
    %20 = vector.shape_cast %14 : vector<16x32xf32> to vector<2x8x4x8xf32>
    %21 = tpu.transpose %20, [0, 2, 1, 3] : vector<2x8x4x8xf32> -> vector<2x4x8x8xf32>
    %22 = vector.shape_cast %21 : vector<2x4x8x8xf32> to vector<8x8x8xf32>
    %23 = arith.truncf %22 : vector<8x8x8xf32> to vector<8x8x8xbf16>
    %24 = vector.shape_cast %15 : vector<16x32xf32> to vector<2x8x4x8xf32>
    %25 = tpu.transpose %24, [0, 2, 1, 3] : vector<2x8x4x8xf32> -> vector<2x4x8x8xf32>
    %26 = vector.shape_cast %25 : vector<2x4x8x8xf32> to vector<8x8x8xf32>
    %27 = arith.truncf %26 : vector<8x8x8xf32> to vector<8x8x8xbf16>
    "tpu.trace_start"() <{level = 10 : i32, message = "bqd,bkd->bqk"}> : () -> ()
    %cst_8 = arith.constant dense<0.000000e+00> : vector<8x8x8xf32>
    %28 = tpu.matmul %19, %23, %cst_8 {dimension_numbers = #tpu.dot_dimension_numbers<[2], [2], [1], [1], [0, 0, 0, 1, 1, 1], [0], [0]>} : vector<8x8x8xbf16>, vector<8x8x8xbf16>, vector<8x8x8xf32> -> vector<8x8x8xf32>
    "tpu.trace_stop"() : () -> ()
    %cst_9 = arith.constant 0.353553385 : f32
    %29 = vector.broadcast %cst_9 : f32 to vector<8x8x8xf32>
    %30 = arith.mulf %28, %29 : vector<8x8x8xf32>
    %c0_10 = arith.constant 0 : index
    %c0_11 = arith.constant 0 : index
    %c0_12 = arith.constant 0 : index
    %31 = vector.load %arg21[%c0_10, %c0_11, %c0_12] : memref<8x1x8xf32, #tpu.memory_space<vmem>>, vector<8x1x8xf32>
    %32 = vector.broadcast %31 : vector<8x1x8xf32> to vector<8x8x8xf32>
    %33 = arith.addf %30, %32 : vector<8x8x8xf32>
    %cst_13 = arith.constant dense<0xFF800000> : vector<8x8xf32>
    %34 = vector.multi_reduction <maximumf>, %33, %cst_13 [2] : vector<8x8x8xf32> to vector<8x8xf32>
    %35 = vector.shape_cast %34 : vector<8x8xf32> to vector<8x8x1xf32>
    %36 = vector.broadcast %35 : vector<8x8x1xf32> to vector<8x8x8xf32>
    %37 = arith.subf %33, %36 : vector<8x8x8xf32>
    %38 = math.exp %37 : vector<8x8x8xf32>
    %cst_14 = arith.constant dense<0.000000e+00> : vector<8x8xf32>
    %39 = vector.multi_reduction <add>, %38, %cst_14 [2] : vector<8x8x8xf32> to vector<8x8xf32>
    %40 = vector.shape_cast %39 : vector<8x8xf32> to vector<8x8x1xf32>
    %41 = tpu.reciprocal %40 {approx = true} : vector<8x8x1xf32> -> vector<8x8x1xf32>
    %42 = vector.broadcast %41 : vector<8x8x1xf32> to vector<8x8x8xf32>
    %43 = arith.mulf %38, %42 : vector<8x8x8xf32>
    %44 = arith.truncf %43 : vector<8x8x8xf32> to vector<8x8x8xbf16>
    "tpu.trace_start"() <{level = 10 : i32, message = "bqk,bkd->bqd"}> : () -> ()
    %cst_15 = arith.constant dense<0.000000e+00> : vector<8x8x8xf32>
    %45 = tpu.matmul %44, %27, %cst_15 {dimension_numbers = #tpu.dot_dimension_numbers<[2], [1], [1], [2], [0, 0, 0, 1, 1, 2], [0], [0]>} : vector<8x8x8xbf16>, vector<8x8x8xbf16>, vector<8x8x8xf32> -> vector<8x8x8xf32>
    "tpu.trace_stop"() : () -> ()
    %46 = vector.shape_cast %45 : vector<8x8x8xf32> to vector<2x4x8x8xf32>
    %47 = tpu.transpose %46, [0, 2, 1, 3] : vector<2x4x8x8xf32> -> vector<2x8x4x8xf32>
    %48 = vector.shape_cast %47 : vector<2x8x4x8xf32> to vector<16x32xf32>
    %49 = arith.truncf %48 : vector<16x32xf32> to vector<16x32xbf16>
    %c0_16 = arith.constant 0 : index
    %c0_17 = arith.constant 0 : index
    %c0_18 = arith.constant 0 : index
    %50 = vector.load %arg7[%c0_16, %c0_17, %c0_18] : memref<1x32x32xf32, #tpu.memory_space<vmem>>, vector<1x32x32xf32>
    %51 = vector.shape_cast %50 : vector<1x32x32xf32> to vector<32x32xf32>
    %52 = arith.truncf %51 : vector<32x32xf32> to vector<32x32xbf16>
    %cst_19 = arith.constant dense<0.000000e+00> : vector<16x32xf32>
    %53 = tpu.matmul %49, %52, %cst_19 {dimension_numbers = #tpu.dot_dimension_numbers<[1], [0], [0], [1], [0, 0, 1, 1], [], []>} : vector<16x32xbf16>, vector<32x32xbf16>, vector<16x32xf32> -> vector<16x32xf32>
    %c0_20 = arith.constant 0 : index
    %c0_21 = arith.constant 0 : index
    %c0_22 = arith.constant 0 : index
    %54 = vector.load %arg8[%c0_20, %c0_21, %c0_22] : memref<1x1x32xf32, #tpu.memory_space<vmem>>, vector<1x1x32xf32>
    %55 = vector.shape_cast %54 : vector<1x1x32xf32> to vector<1x32xf32>
    %56 = vector.broadcast %55 : vector<1x32xf32> to vector<16x32xf32>
    %57 = arith.addf %53, %56 : vector<16x32xf32>
    %58 = arith.addf %3, %57 : vector<16x32xf32>
    %c0_23 = arith.constant 0 : index
    %c0_24 = arith.constant 0 : index
    %c0_25 = arith.constant 0 : index
    %59 = vector.load %arg9[%c0_23, %c0_24, %c0_25] : memref<1x1x32xf32, #tpu.memory_space<vmem>>, vector<1x1x32xf32>
    %60 = vector.shape_cast %59 : vector<1x1x32xf32> to vector<1x32xf32>
    %c0_26 = arith.constant 0 : index
    %c0_27 = arith.constant 0 : index
    %c0_28 = arith.constant 0 : index
    %61 = vector.load %arg10[%c0_26, %c0_27, %c0_28] : memref<1x1x32xf32, #tpu.memory_space<vmem>>, vector<1x1x32xf32>
    %62 = vector.shape_cast %61 : vector<1x1x32xf32> to vector<1x32xf32>
    %cst_29 = arith.constant dense<0.000000e+00> : vector<16xf32>
    %63 = vector.multi_reduction <add>, %58, %cst_29 [1] : vector<16x32xf32> to vector<16xf32>
    %64 = vector.shape_cast %63 : vector<16xf32> to vector<16x1xf32>
    %cst_30 = arith.constant 3.200000e+01 : f32
    %65 = vector.broadcast %cst_30 : f32 to vector<16x1xf32>
    %66 = arith.divf %64, %65 : vector<16x1xf32>
    %67 = vector.broadcast %66 : vector<16x1xf32> to vector<16x32xf32>
    %68 = arith.subf %58, %67 : vector<16x32xf32>
    %69 = arith.mulf %68, %68 : vector<16x32xf32>
    %cst_31 = arith.constant dense<0.000000e+00> : vector<16xf32>
    %70 = vector.multi_reduction <add>, %69, %cst_31 [1] : vector<16x32xf32> to vector<16xf32>
    %71 = vector.shape_cast %70 : vector<16xf32> to vector<16x1xf32>
    %cst_32 = arith.constant 3.200000e+01 : f32
    %72 = vector.broadcast %cst_32 : f32 to vector<16x1xf32>
    %73 = arith.divf %71, %72 : vector<16x1xf32>
    %cst_33 = arith.constant 9.99999996E-13 : f32
    %74 = vector.broadcast %cst_33 : f32 to vector<16x1xf32>
    %75 = arith.addf %73, %74 : vector<16x1xf32>
    %76 = math.rsqrt %75 : vector<16x1xf32>
    %77 = vector.broadcast %66 : vector<16x1xf32> to vector<16x32xf32>
    %78 = arith.subf %58, %77 : vector<16x32xf32>
    %79 = vector.broadcast %76 : vector<16x1xf32> to vector<16x32xf32>
    %80 = arith.mulf %78, %79 : vector<16x32xf32>
    %81 = vector.broadcast %60 : vector<1x32xf32> to vector<16x32xf32>
    %82 = arith.mulf %80, %81 : vector<16x32xf32>
    %83 = vector.broadcast %62 : vector<1x32xf32> to vector<16x32xf32>
    %84 = arith.addf %82, %83 : vector<16x32xf32>
    %85 = arith.truncf %84 : vector<16x32xf32> to vector<16x32xbf16>
    %c0_34 = arith.constant 0 : index
    %c0_35 = arith.constant 0 : index
    %c0_36 = arith.constant 0 : index
    %86 = vector.load %arg11[%c0_34, %c0_35, %c0_36] : memref<1x32x64xf32, #tpu.memory_space<vmem>>, vector<1x32x64xf32>
    %87 = vector.shape_cast %86 : vector<1x32x64xf32> to vector<32x64xf32>
    %88 = arith.truncf %87 : vector<32x64xf32> to vector<32x64xbf16>
    %cst_37 = arith.constant dense<0.000000e+00> : vector<16x64xf32>
    %89 = tpu.matmul %85, %88, %cst_37 {dimension_numbers = #tpu.dot_dimension_numbers<[1], [0], [0], [1], [0, 0, 1, 1], [], []>} : vector<16x32xbf16>, vector<32x64xbf16>, vector<16x64xf32> -> vector<16x64xf32>
    %c0_38 = arith.constant 0 : index
    %c0_39 = arith.constant 0 : index
    %c0_40 = arith.constant 0 : index
    %90 = vector.load %arg12[%c0_38, %c0_39, %c0_40] : memref<1x1x64xf32, #tpu.memory_space<vmem>>, vector<1x1x64xf32>
    %91 = vector.shape_cast %90 : vector<1x1x64xf32> to vector<1x64xf32>
    %92 = vector.broadcast %91 : vector<1x64xf32> to vector<16x64xf32>
    %93 = arith.addf %89, %92 : vector<16x64xf32>
    %cst_41 = arith.constant 5.000000e-01 : f32
    %94 = vector.broadcast %cst_41 : f32 to vector<16x64xf32>
    %95 = arith.mulf %94, %93 : vector<16x64xf32>
    %cst_42 = arith.constant 4.471500e-02 : f32
    %96 = vector.broadcast %cst_42 : f32 to vector<16x64xf32>
    %97 = arith.mulf %96, %93 : vector<16x64xf32>
    %98 = arith.mulf %97, %93 : vector<16x64xf32>
    %99 = arith.mulf %98, %93 : vector<16x64xf32>
    %100 = arith.addf %93, %99 : vector<16x64xf32>
    %cst_43 = arith.constant 0.797884583 : f32
    %101 = vector.broadcast %cst_43 : f32 to vector<16x64xf32>
    %102 = arith.mulf %101, %100 : vector<16x64xf32>
    %103 = math.tanh %102 : vector<16x64xf32>
    %cst_44 = arith.constant 1.000000e+00 : f32
    %104 = vector.broadcast %cst_44 : f32 to vector<16x64xf32>
    %105 = arith.addf %104, %103 : vector<16x64xf32>
    %106 = arith.mulf %95, %105 : vector<16x64xf32>
    %107 = arith.truncf %106 : vector<16x64xf32> to vector<16x64xbf16>
    %c0_45 = arith.constant 0 : index
    %c0_46 = arith.constant 0 : index
    %c0_47 = arith.constant 0 : index
    %108 = vector.load %arg13[%c0_45, %c0_46, %c0_47] : memref<1x64x32xf32, #tpu.memory_space<vmem>>, vector<1x64x32xf32>
    %109 = vector.shape_cast %108 : vector<1x64x32xf32> to vector<64x32xf32>
    %110 = arith.truncf %109 : vector<64x32xf32> to vector<64x32xbf16>
    %cst_48 = arith.constant dense<0.000000e+00> : vector<16x32xf32>
    %111 = tpu.matmul %107, %110, %cst_48 {dimension_numbers = #tpu.dot_dimension_numbers<[1], [0], [0], [1], [0, 0, 1, 1], [], []>} : vector<16x64xbf16>, vector<64x32xbf16>, vector<16x32xf32> -> vector<16x32xf32>
    %c0_49 = arith.constant 0 : index
    %c0_50 = arith.constant 0 : index
    %c0_51 = arith.constant 0 : index
    %112 = vector.load %arg14[%c0_49, %c0_50, %c0_51] : memref<1x1x32xf32, #tpu.memory_space<vmem>>, vector<1x1x32xf32>
    %113 = vector.shape_cast %112 : vector<1x1x32xf32> to vector<1x32xf32>
    %114 = vector.broadcast %113 : vector<1x32xf32> to vector<16x32xf32>
    %115 = arith.addf %111, %114 : vector<16x32xf32>
    %116 = arith.addf %84, %115 : vector<16x32xf32>
    %c0_52 = arith.constant 0 : index
    %c0_53 = arith.constant 0 : index
    %c0_54 = arith.constant 0 : index
    %117 = vector.load %arg15[%c0_52, %c0_53, %c0_54] : memref<1x1x32xf32, #tpu.memory_space<vmem>>, vector<1x1x32xf32>
    %118 = vector.shape_cast %117 : vector<1x1x32xf32> to vector<1x32xf32>
    %c0_55 = arith.constant 0 : index
    %c0_56 = arith.constant 0 : index
    %c0_57 = arith.constant 0 : index
    %119 = vector.load %arg16[%c0_55, %c0_56, %c0_57] : memref<1x1x32xf32, #tpu.memory_space<vmem>>, vector<1x1x32xf32>
    %120 = vector.shape_cast %119 : vector<1x1x32xf32> to vector<1x32xf32>
    %cst_58 = arith.constant dense<0.000000e+00> : vector<16xf32>
    %121 = vector.multi_reduction <add>, %116, %cst_58 [1] : vector<16x32xf32> to vector<16xf32>
    %122 = vector.shape_cast %121 : vector<16xf32> to vector<16x1xf32>
    %cst_59 = arith.constant 3.200000e+01 : f32
    %123 = vector.broadcast %cst_59 : f32 to vector<16x1xf32>
    %124 = arith.divf %122, %123 : vector<16x1xf32>
    %125 = vector.broadcast %124 : vector<16x1xf32> to vector<16x32xf32>
    %126 = arith.subf %116, %125 : vector<16x32xf32>
    %127 = arith.mulf %126, %126 : vector<16x32xf32>
    %cst_60 = arith.constant dense<0.000000e+00> : vector<16xf32>
    %128 = vector.multi_reduction <add>, %127, %cst_60 [1] : vector<16x32xf32> to vector<16xf32>
    %129 = vector.shape_cast %128 : vector<16xf32> to vector<16x1xf32>
    %cst_61 = arith.constant 3.200000e+01 : f32
    %130 = vector.broadcast %cst_61 : f32 to vector<16x1xf32>
    %131 = arith.divf %129, %130 : vector<16x1xf32>
    %cst_62 = arith.constant 9.99999996E-13 : f32
    %132 = vector.broadcast %cst_62 : f32 to vector<16x1xf32>
    %133 = arith.addf %131, %132 : vector<16x1xf32>
    %134 = math.rsqrt %133 : vector<16x1xf32>
    %135 = vector.broadcast %124 : vector<16x1xf32> to vector<16x32xf32>
    %136 = arith.subf %116, %135 : vector<16x32xf32>
    %137 = vector.broadcast %134 : vector<16x1xf32> to vector<16x32xf32>
    %138 = arith.mulf %136, %137 : vector<16x32xf32>
    %139 = vector.broadcast %118 : vector<1x32xf32> to vector<16x32xf32>
    %140 = arith.mulf %138, %139 : vector<16x32xf32>
    %141 = vector.broadcast %120 : vector<1x32xf32> to vector<16x32xf32>
    %142 = arith.addf %140, %141 : vector<16x32xf32>
    %c0_63 = arith.constant 0 : index
    %c0_64 = arith.constant 0 : index
    %143 = vector.load %arg20[%c0_63, %c0_64] : memref<16x32xf32, #tpu.memory_space<vmem>>, vector<16x32xf32>
    tpu.vector_store %arg20[%c0_63, %c0_64], %142 {strides = array<i32>} : memref<16x32xf32, #tpu.memory_space<vmem>>, vector<16x32xf32>,
    %c1_i32 = arith.constant 1 : i32
    %144 = arith.cmpi eq, %arg0, %c1_i32 : i32
    %145 = arith.extui %144 : i1 to i32
    %c0_i32_65 = arith.constant 0 : i32
    %146 = arith.cmpi ne, %145, %c0_i32_65 : i32
    scf.if %146 {
      %c0_66 = arith.constant 0 : index
      %c0_67 = arith.constant 0 : index
      %147 = vector.load %arg17[%c0_66, %c0_67] : memref<32x128xf32, #tpu.memory_space<vmem>>, vector<32x128xf32>
      %cst_68 = arith.constant dense<0.000000e+00> : vector<16x128xf32>
      %148 = tpu.matmul %142, %147, %cst_68 {dimension_numbers = #tpu.dot_dimension_numbers<[1], [0], [0], [1], [0, 0, 1, 1], [], []>} : vector<16x32xf32>, vector<32x128xf32>, vector<16x128xf32> -> vector<16x128xf32>
      %c0_69 = arith.constant 0 : index
      %c0_70 = arith.constant 0 : index
      %149 = vector.load %arg18[%c0_69, %c0_70] : memref<1x128xf32, #tpu.memory_space<vmem>>, vector<1x128xf32>
      %150 = vector.broadcast %149 : vector<1x128xf32> to vector<16x128xf32>
      %151 = arith.addf %148, %150 : vector<16x128xf32>
      %cst_71 = arith.constant 0.000000e+00 : f32
      %152 = vector.broadcast %cst_71 : f32 to vector<16x128xf32>
      %153 = arith.subf %152, %151 : vector<16x128xf32>
      %154 = math.exp %153 : vector<16x128xf32>
      %cst_72 = arith.constant 1.000000e+00 : f32
      %155 = vector.broadcast %cst_72 : f32 to vector<16x128xf32>
      %156 = arith.addf %155, %154 : vector<16x128xf32>
      %cst_73 = arith.constant 1.000000e+00 : f32
      %157 = vector.broadcast %cst_73 : f32 to vector<16x128xf32>
      %158 = arith.divf %157, %156 : vector<16x128xf32>
      %c0_74 = arith.constant 0 : index
      %c0_75 = arith.constant 0 : index
      %159 = vector.load %arg19[%c0_74, %c0_75] : memref<16x128xf32, #tpu.memory_space<vmem>>, vector<16x128xf32>
      tpu.vector_store %arg19[%c0_74, %c0_75], %158 {strides = array<i32>} : memref<16x128xf32, #tpu.memory_space<vmem>>, vector<16x128xf32>,
    } else {
    }
    return
  }
  func.func @transform_0(%arg0: i32) -> (i32, i32, i32) {
    %c0_i32 = arith.constant 0 : i32
    %c0_i32_0 = arith.constant 0 : i32
    %c0_i32_1 = arith.constant 0 : i32
    %c0_i32_2 = arith.constant 0 : i32
    return %c0_i32, %c0_i32_0, %c0_i32_1 : i32, i32, i32
  }
  func.func @transform_1(%arg0: i32) -> (i32, i32) {
    %c0_i32 = arith.constant 0 : i32
    %c0_i32_0 = arith.constant 0 : i32
    %c0_i32_1 = arith.constant 0 : i32
    return %c0_i32, %c0_i32_0 : i32, i32
  }
  func.func @transform_2(%arg0: i32) -> (i32, i32) {
    %c0_i32 = arith.constant 0 : i32
    %c0_i32_0 = arith.constant 0 : i32
    %c0_i32_1 = arith.constant 0 : i32
    return %c0_i32, %c0_i32_0 : i32, i32
  }
  func.func @transform_3(%arg0: i32) -> (i32, i32) {
    %c0_i32 = arith.constant 0 : i32
    %c0_i32_0 = arith.constant 0 : i32
    %c0_i32_1 = arith.constant 0 : i32
    return %c0_i32, %c0_i32_0 : i32, i32
  }
  func.func @transform_4(%arg0: i32) -> (i32, i32, i32) {
    %c0_i32 = arith.constant 0 : i32
    %c0_i32_0 = arith.constant 0 : i32
    %c0_i32_1 = arith.constant 0 : i32
    return %arg0, %c0_i32, %c0_i32_0 : i32, i32, i32
  }
  func.func @transform_5(%arg0: i32) -> (i32, i32, i32) {
    %c0_i32 = arith.constant 0 : i32
    %c0_i32_0 = arith.constant 0 : i32
    %c0_i32_1 = arith.constant 0 : i32
    return %arg0, %c0_i32, %c0_i32_0 : i32, i32, i32
  }
  func.func @transform_6(%arg0: i32) -> (i32, i32, i32) {
    %c0_i32 = arith.constant 0 : i32
    %c0_i32_0 = arith.constant 0 : i32
    %c0_i32_1 = arith.constant 0 : i32
    return %arg0, %c0_i32, %c0_i32_0 : i32, i32, i32
  }
  func.func @transform_7(%arg0: i32) -> (i32, i32, i32) {
    %c0_i32 = arith.constant 0 : i32
    %c0_i32_0 = arith.constant 0 : i32
    %c0_i32_1 = arith.constant 0 : i32
    return %arg0, %c0_i32, %c0_i32_0 : i32, i32, i32
  }
  func.func @transform_8(%arg0: i32) -> (i32, i32, i32) {
    %c0_i32 = arith.constant 0 : i32
    %c0_i32_0 = arith.constant 0 : i32
    %c0_i32_1 = arith.constant 0 : i32
    return %arg0, %c0_i32, %c0_i32_0 : i32, i32, i32
  }
  func.func @transform_9(%arg0: i32) -> (i32, i32, i32) {
    %c0_i32 = arith.constant 0 : i32
    %c0_i32_0 = arith.constant 0 : i32
    %c0_i32_1 = arith.constant 0 : i32
    return %arg0, %c0_i32, %c0_i32_0 : i32, i32, i32
  }
  func.func @transform_10(%arg0: i32) -> (i32, i32, i32) {
    %c0_i32 = arith.constant 0 : i32
    %c0_i32_0 = arith.constant 0 : i32
    %c0_i32_1 = arith.constant 0 : i32
    return %arg0, %c0_i32, %c0_i32_0 : i32, i32, i32
  }
  func.func @transform_11(%arg0: i32) -> (i32, i32, i32) {
    %c0_i32 = arith.constant 0 : i32
    %c0_i32_0 = arith.constant 0 : i32
    %c0_i32_1 = arith.constant 0 : i32
    return %arg0, %c0_i32, %c0_i32_0 : i32, i32, i32
  }
  func.func @transform_12(%arg0: i32) -> (i32, i32, i32) {
    %c0_i32 = arith.constant 0 : i32
    %c0_i32_0 = arith.constant 0 : i32
    %c0_i32_1 = arith.constant 0 : i32
    return %arg0, %c0_i32, %c0_i32_0 : i32, i32, i32
  }
  func.func @transform_13(%arg0: i32) -> (i32, i32, i32) {
    %c0_i32 = arith.constant 0 : i32
    %c0_i32_0 = arith.constant 0 : i32
    %c0_i32_1 = arith.constant 0 : i32
    return %arg0, %c0_i32, %c0_i32_0 : i32, i32, i32
  }
  func.func @transform_14(%arg0: i32) -> (i32, i32, i32) {
    %c0_i32 = arith.constant 0 : i32
    %c0_i32_0 = arith.constant 0 : i32
    %c0_i32_1 = arith.constant 0 : i32
    return %arg0, %c0_i32, %c0_i32_0 : i32, i32, i32
  }
  func.func @transform_15(%arg0: i32) -> (i32, i32, i32) {
    %c0_i32 = arith.constant 0 : i32
    %c0_i32_0 = arith.constant 0 : i32
    %c0_i32_1 = arith.constant 0 : i32
    return %arg0, %c0_i32, %c0_i32_0 : i32, i32, i32
  }
  func.func @transform_16(%arg0: i32) -> (i32, i32) {
    %c0_i32 = arith.constant 0 : i32
    %c0_i32_0 = arith.constant 0 : i32
    %c0_i32_1 = arith.constant 0 : i32
    return %c0_i32, %c0_i32_0 : i32, i32
  }
  func.func @transform_17(%arg0: i32) -> (i32, i32) {
    %c0_i32 = arith.constant 0 : i32
    %c0_i32_0 = arith.constant 0 : i32
    %c0_i32_1 = arith.constant 0 : i32
    return %c0_i32, %c0_i32_0 : i32, i32
  }
  func.func @transform_18(%arg0: i32) -> (i32, i32) {
    %c0_i32 = arith.constant 0 : i32
    %c0_i32_0 = arith.constant 0 : i32
    %c0_i32_1 = arith.constant 0 : i32
    return %c0_i32, %c0_i32_0 : i32, i32
  }
}

</mosaic_0001>

<bundles_post_ra>
// kernel: bert_cls_to_reg_forward.1
= control target key start
LH: loop header
LB: loop body
LE: loop exit
PB: predicated region body
PF: predicated region fallthrough
CT: control target
= control target key end

     0   :  { %s3075_s27 = smov 0   ;;  %s3763_s0 = inlined_call_operand.vmem [shape: f32[2,8,32], index: 0, kind: input, shape index: {}]   ;;  %s3764_s1 = inlined_call_operand.vmem [shape: f32[2,8], index: 1, kind: input, shape index: {}]   ;;  %s3765_s2 = inlined_call_operand.vmem [shape: f32[1,32], index: 2, kind: input, shape index: {}]   ;;  %s3766_s3 = inlined_call_operand.vmem [shape: f32[1,32], index: 3, kind: input, shape index: {}]   ;;  %s3767_s4 = inlined_call_operand.vmem [shape: f32[2,32,96], index: 4, kind: input, shape index: {}]   ;;  %s3768_s5 = inlined_call_operand.vmem [shape: f32[2,1,96], index: 5, kind: input, shape index: {}]   ;;  %s3769_s6 = inlined_call_operand.vmem [shape: f32[2,32,32], index: 6, kind: input, shape index: {}]   ;;  %s3770_s7 = inlined_call_operand.vmem [shape: f32[2,1,32], index: 7, kind: input, shape index: {}]   ;;  %s3771_s8 = inlined_call_operand.vmem [shape: f32[2,1,32], index: 8, kind: input, shape index: {}]   ;;  %s3772_s9 = inlined_call_operand.vmem [shape: f32[2,1,32], index: 9, kind: input, shape index: {}]   ;;  %s3773_s10 = inlined_call_operand.vmem [shape: f32[2,32,64], index: 10, kind: input, shape index: {}]   ;;  %s3774_s11 = inlined_call_operand.vmem [shape: f32[2,1,64], index: 11, kind: input, shape index: {}]   ;;  %s3775_s12 = inlined_call_operand.vmem [shape: f32[2,64,32], index: 12, kind: input, shape index: {}]   ;;  %s3776_s13 = inlined_call_operand.vmem [shape: f32[2,1,32], index: 13, kind: input, shape index: {}]   ;;  %s3777_s14 = inlined_call_operand.vmem [shape: f32[2,1,32], index: 14, kind: input, shape index: {}]   ;;  %s3778_s15 = inlined_call_operand.vmem [shape: f32[2,1,32], index: 15, kind: input, shape index: {}]   ;;  %s3779_s16 = inlined_call_operand.vmem [shape: f32[32,128], index: 16, kind: input, shape index: {}]   ;;  %s3780_s17 = inlined_call_operand.vmem [shape: f32[1,128], index: 17, kind: input, shape index: {}]   ;;  %s3781_s18 = inlined_call_operand.vmem [shape: f32[16,128], index: 18, kind: output, shape index: {}]  }
   0x1   :  { %3787 = sst [smem:[#allocation6_spill]] %s3763_s0 }
   0x2   :  { %3788 = sst [smem:[#allocation7_spill]] %s3764_s1 }
   0x3   :  { %3789 = sst [smem:[#allocation8_spill]] %s3765_s2 }
   0x4   :  { %3790 = sst [smem:[#allocation9_spill]] %s3767_s4 }
   0x5   :  { %3791 = sst [smem:[#allocation10_spill]] %s3769_s6 }
   0x6   :  { %3792 = sst [smem:[#allocation11_spill]] %s3779_s16 }
   0x7   :  { %3793 = sst [smem:[#allocation12_spill]] %s3780_s17 }
   0x8   :  { %3794 = sst [smem:[#allocation13_spill]] %s3781_s18 }
   0x9 LB: > { %3795 = sst [smem:[#allocation4_spill]] %s2966_s27  ;;  %s3081_s28 = sadd.s32 4294967295, %s2966_s27   ;;  %s2966_s27 = sphi %s3075_s27, %s28_s27  }
   0xa   : > { %p2761_p0 = scmp.ge.s32.totalorder %s2966_s27, 1  ;;  %p601_p1 = scmp.lt.s32.totalorder %s2966_s27, 3 }
   0xc   : > { %p602_p2 = pnand %p2761_p0, %p601_p1 }
   0xe   : > { %605 = sbr.rel (%p602_p2) target bundleno = 2575 (0xa0f), region = 92 }
  0x13   : > { %p689_p3 = scmp.lt.s32.totalorder %s3081_s28, 1  ;;  %s3796_s4 = sld [smem:[#allocation9_spill]] }
  0x14   : > { %s3797_s6 = sld [smem:[#allocation10_spill]]  ;;  %p2770_p4 = scmp.ne.s32.totalorder %s3081_s28, 0 }
  0x15   : > { %s3087_s29 = scalar_select %p689_p3, %s3081_s28, 1 }
  0x16   : > { %s3799_s25 = sld [smem:[#allocation6_spill]] (!%p2770_p4) }
  0x17   : > { %s2796_s30 = sshll.u32 %s3087_s29, 5  ;;  %s726_s0 = scalar_lea.vmem %s3776_s13, %s3087_s29 }
  0x18   : > { %s729_s20 = scalar_lea.vmem %s3777_s14, %s3087_s29  ;;  %s732_s16 = scalar_lea.vmem %s3778_s15, %s3087_s29 }
  0x19   : > { %s3097_s22 = scalar_lea.vmem %s3796_s4, %s2796_s30  ;;  %s3119_s4 = scalar_lea.vmem %s3773_s10, %s2796_s30 }
  0x1a   : > { %s3102_s24 = scalar_lea.vmem %s3797_s6, %s2796_s30  ;;  %s718_s6 = scalar_lea.vmem %s3774_s11, %s3087_s29 }
  0x1b   : > { %3798 = sst [smem:[#allocation5_spill]] %s3102_s24  ;;  %s2799_s24 = sshll.u32 %s3087_s29, 6 }
  0x1c   : > { %s3129_s27 = scalar_lea.vmem %s3775_s12, %s2799_s24  ;;  %737 = sbr.rel (%p2770_p4) target bundleno = 311 (0x137), region = 96 }
  0x1d   : > { %s3800_s18 = sld [smem:[#allocation7_spill]] (!%p2770_p4) }
  0x1e   : > { %s3801_s21 = sld [smem:[#allocation8_spill]] (!%p2770_p4) }
  0x21   : > { %v738_v0 = vld [vmem:[%s3799_s25] sm:$0xff]  ;;  %vm742_vm0 = vcmask 261120   ;;  %v739_v2 = vld [vmem:[%s3799_s25 + $0x8] sm:$0xff]  ;;  %v2968_v4 = vmov 32.0   ;;  %vm812_vm2 = vcmask 57344  }
  0x22   : > { %v743_v1 = vsel %vm742_vm0, %v738_v0, 0.0  ;;  %v746_v3 = vsel %vm742_vm0, %v739_v2, 0.0  ;;  %2826 = vrcp.f32 %v2968_v4  ;;  %v2825_v42 = vld [vmem:[%s3766_s3] ss:$0 sm:$0xff] }
  0x23   : > { %744 = vadd.xlane.f32.xlu0 %v743_v1  ;;  %v806_v21 = vld [vmem:[%s3800_s18] sm:$0x3] }
  0x24   : > { %v807_v22 = vsub.f32 1.0, %v806_v21  ;;  %v2824_v39 = vld [vmem:[%s3801_s21] ss:$0 sm:$0xff] }
  0x26   : > { %v808_v25 = vmul.f32 -10000.0, %v807_v22 }
  0x28   : > { %v2827_v5 = vpop.eup %2826  ;;  %v810_v27 = vrot.slane %v808_v25, 1  ;;  %813 = vst.msk [vmem:[#allocation3] sm:$0x1] %vm812_vm2, %v808_v25 }
  0x29   : > { %v750_v6 = vmul.f32 32.0, %v2827_v5  ;;  %vm754_vm1 = vweird.f32 %v2827_v5  ;;  %814 = vst.msk [vmem:[#allocation3 + $0x1] sm:$0x1] %vm812_vm2, %v808_v25 }
  0x2a   : > { %815 = vst.msk [vmem:[#allocation3 + $0x2] sm:$0x1] %vm812_vm2, %v808_v25 }
  0x2b   : > { %747 = vadd.xlane.f32.xlu0 %v746_v3  ;;  %v751_v7 = vsub.f32 1.0, %v750_v6  ;;  %816 = vst.msk [vmem:[#allocation3 + $0x3] sm:$0x1] %vm812_vm2, %v808_v25 }
  0x2c   : > { %817 = vst.msk [vmem:[#allocation3 + $0x4] sm:$0x1] %vm812_vm2, %v810_v27 }
  0x2d   : > { %v752_v8 = vmul.f32 %v2827_v5, %v751_v7  ;;  %818 = vst.msk [vmem:[#allocation3 + $0x5] sm:$0x1] %vm812_vm2, %v810_v27 }
  0x2e   : > { %819 = vst.msk [vmem:[#allocation3 + $0x6] sm:$0x1] %vm812_vm2, %v810_v27 }
  0x2f   : > { %v753_v9 = vadd.f32 %v2827_v5, %v752_v8  ;;  %820 = vst.msk [vmem:[#allocation3 + $0x7] sm:$0x1] %vm812_vm2, %v810_v27 }
  0x31   : > { %v755_v10 = vsel %vm754_vm1, %v2827_v5, %v753_v9 }
  0x96   : > { %v745_v11 = vpop.xlane.xlu0 %744 }
  0x97   : > { %v756_v12 = vmul.f32 %v755_v10, %v745_v11 }
  0x99   : > { %v758_v13 = vsub.f32 %v738_v0, %v756_v12 }
  0x9b   : > { %v760_v14 = vmul.f32 %v758_v13, %v758_v13 }
  0x9d   : > { %v762_v15 = vsel %vm742_vm0, %v760_v14, 0.0 }
  0x9e   : > { %763 = vadd.xlane.f32.xlu1 %v762_v15  ;;  %v748_v16 = vpop.xlane.xlu0 %747 }
  0x9f   : > { %v757_v17 = vmul.f32 %v755_v10, %v748_v16 }
  0xa1   : > { %v759_v18 = vsub.f32 %v739_v2, %v757_v17 }
  0xa3   : > { %v761_v19 = vmul.f32 %v759_v18, %v759_v18 }
  0xa5   : > { %v765_v20 = vsel %vm742_vm0, %v761_v19, 0.0 }
  0xa6   : > { %766 = vadd.xlane.f32.xlu1 %v765_v20 }
 0x111   : > { %v764_v23 = vpop.xlane.xlu1 %763 }
 0x112   : > { %v768_v24 = vmul.f32 %v764_v23, %v755_v10 }
 0x114   : > { %v770_v26 = vadd.f32 1e-12, %v768_v24 }
 0x116   : > { %2828 = vrsqrt.f32 %v770_v26  ;;  %vm778_vm4 = vweird.f32 %v770_v26 }
 0x119   : > { %v767_v28 = vpop.xlane.xlu1 %766 }
 0x11a   : > { %v769_v29 = vmul.f32 %v767_v28, %v755_v10 }
 0x11c   : > { %v2829_v30 = vpop.eup %2828  ;;  %v771_v31 = vadd.f32 1e-12, %v769_v29 }
 0x11d   : > { %v773_v32 = vmul.f32 %v2829_v30, %v770_v26  ;;  %vm779_vm3 = vweird.f32 %v2829_v30 }
 0x11e   : > { %2830 = vrsqrt.f32 %v771_v31  ;;  %vm780_vm5 = vmor %vm778_vm4, %vm779_vm3  ;;  %vm788_vm7 = vweird.f32 %v771_v31 }
 0x11f   : > { %v774_v33 = vmul.f32 %v2829_v30, %v773_v32 }
 0x121   : > { %v775_v34 = vmul.f32 0.5, %v774_v33 }
 0x123   : > { %v776_v35 = vsub.f32 1.5, %v775_v34 }
 0x124   : > { %v2831_v36 = vpop.eup %2830 }
 0x125   : > { %v777_v37 = vmul.f32 %v2829_v30, %v776_v35  ;;  %v783_v38 = vmul.f32 %v2831_v36, %v771_v31  ;;  %vm789_vm6 = vweird.f32 %v2831_v36 }
 0x126   : > { %vm790_vm8 = vmor %vm788_vm7, %vm789_vm6 }
 0x127   : > { %v781_v40 = vsel %vm780_vm5, %v2829_v30, %v777_v37  ;;  %v784_v41 = vmul.f32 %v2831_v36, %v783_v38 }
 0x128   : > { %v792_v43 = vmul.f32 %v781_v40, %v758_v13 }
 0x129   : > { %v785_v44 = vmul.f32 0.5, %v784_v41 }
 0x12a   : > { %v797_v45 = vmul.f32 %v2824_v39, %v792_v43 }
 0x12b   : > { %v786_v46 = vsub.f32 1.5, %v785_v44 }
 0x12c   : > { %v802_v47 = vadd.f32 %v2825_v42, %v797_v45 }
 0x12d   : > { %v787_v48 = vmul.f32 %v2831_v36, %v786_v46 }
 0x12e   : > { %804 = vst.msk [vmem:[#allocation2] sm:$0xff] %vm742_vm0, %v802_v47 }
 0x12f   : > { %v791_v49 = vsel %vm790_vm8, %v2831_v36, %v787_v48 }
 0x130   : > { %v793_v50 = vmul.f32 %v791_v49, %v759_v18 }
 0x132   : > { %v798_v51 = vmul.f32 %v2824_v39, %v793_v50 }
 0x134   : > { %v803_v52 = vadd.f32 %v2825_v42, %v798_v51 }
 0x136   : > { %805 = vst.msk [vmem:[#allocation2 + $0x8] sm:$0xff] %vm742_vm0, %v803_v52 }
 0x137 PF: > { %v826_v53 = vld [vmem:[%s3097_s22 + $0x10] sm:$0xff]  ;;  %v827_v54 = vld [vmem:[%s3097_s22 + $0x18] sm:$0xff]  ;;  %v824_v55 = vld [vmem:[%s3097_s22] sm:$0xff]  ;;  %vm834_vm9 = vcmask 261120   ;;  %s3802_s1 = scalar_lea.vmem %s3768_s5, %s3087_s29  ;;  %s2969_s17 = smov 104   ;;  %vm873_vm10 = vcmask 1047556  }
 0x138   : > { %v829_v56 = vpack.c.bf16 %v827_v54, %v826_v53  ;;  %v825_v57 = vld [vmem:[%s3097_s22 + $0x8] sm:$0xff]  ;;  %v821_v58 = vld [vmem:[#allocation2] sm:$0xff]  ;;  %s2970_s18 = smov 120   ;;  %s2971_s22 = smov 112   ;;  %v2972_v9 = vmov 1983009808  }
 0x139   : > { %v828_v60 = vpack.c.bf16 %v825_v57, %v824_v55  ;;  %v2887_v62 = vld [vmem:[%s3802_s1] ss:$0 sm:$0xff]  ;;  %v878_v10 = vunpack.c.l.s4 %v2972_v9  ;;  %s2973_s19 = smov 96   ;;  %v2974_v19 = vmov 1934713408   ;;  %vm1605_vm11 = vcmask 64512  }
 0x13a   : > { %844 = vmatpush.bf16.msra.mxu0 %v829_v56  ;;  %v902_v20 = vunpack.c.l.s4 %v2974_v19  ;;  %s2975_s30 = smov 64   ;;  %vm1905_vm12 = vcmask 1043456   ;;  %s3803_s21 = sld [smem:[#allocation5_spill]]  ;;  %vm2301_vm13 = vcmask 130048   ;;  %vm2304_vm14 = vcmask 195584  }
 0x13b   : > { %v3187_v13 = vunpack.c.0.s8 %v878_v10  ;;  %s2976_s2 = smov 24   ;;  %s2977_s23 = smov 16   ;;  %vm2463_vm6 = vcmask 523264  }
 0x13c   : > { %v3211_v31 = vunpack.c.0.s8 %v902_v20  ;;  %s2978_s24 = smov 8   ;;  %p2791_p5 = scmp.ne.s32.totalorder %s3081_s28, 1 }
 0x13d   : > { %v822_v59 = vld [vmem:[#allocation2 + $0x8] sm:$0xff] }
 0x13e   : > { %v823_v61 = vpack.c.bf16 %v822_v59, %v821_v58  ;;  %845 = vmatpush.bf16.msra.mxu0 %v828_v60 }
 0x141   : > { %2771 = vmatmul.msk.bf16.vlgmr.msra.gmra.mxu0 %vm834_vm9, %v823_v61 }
 0x1be   : > { %v847_v63 = vpop.f32.mrf.mxu0 }
 0x1bf   : > { %v848_v0 = vadd.f32 %v2887_v62, %v847_v63 }
 0x1c1   : > { %866 = vrot.lane.b32.xlu1 %v848_v0, %s2969_s17  ;;  %854 = vrot.lane.b32.xlu0 %v848_v0, %s2970_s18  ;;  %v875_v17 = vrot.slane %v848_v0, 4 }
 0x1c6   : > { %v849_v1 = vpop.f32.mrf.mxu0 }
 0x1c7   : > { %v3175_v2 = vadd.f32 %v2887_v62, %v849_v1 }
 0x1c9   : > { %862 = vrot.lane.b32.xlu2 %v3175_v2, %s2971_s22  ;;  %856 = vrot.lane.b32.xlu1 %v3175_v2, %s2970_s18 }
 0x1ca   : > { %860 = vrot.lane.b32.xlu0 %v848_v0, %s2971_s22  ;;  %s3805_s22 = scalar_lea.vmem %s3771_s8, %s3087_s29 }
 0x1d1   : > { %868 = vrot.lane.b32.xlu2 %v3175_v2, %s2969_s17  ;;  %s3804_s17 = scalar_lea.vmem %s3770_s7, %s3087_s29 }
 0x223   : > { %v3180_v3 = vpop.permute.xlu2 %862 }
 0x22b   : > { %v3189_v14 = vpop.permute.xlu2 %868 }
 0x22c   : > { %v3201_v23 = vpack.i.bf16 %v3189_v14, %v3180_v3 }
 0x233   : > { %v867_v4 = vpop.permute.xlu1 %866  ;;  %v855_v5 = vpop.permute.xlu0 %854 }
 0x234   : > { %v885_v6 = vrot.slane %v867_v4, 4  ;;  %v887_v7 = vrot.slane %v855_v5, 4  ;;  %v3182_v8 = vpack.i.bf16 %v855_v5, %v848_v0 }
 0x236   : > { %v886_v11 = vsel %vm873_vm10, %v885_v6, %v855_v5  ;;  %v888_v12 = vsel %vm873_vm10, %v867_v4, %v887_v7  ;;  %2833 = vrot.lane.b32.xlu0 %v3182_v8, %s2973_s19 }
 0x237   : > { %v896_v15 = vperm.slane %v888_v12, %v3187_v13  ;;  %v892_v18 = vperm.slane %v886_v11, %v3187_v13 }
 0x239   : > { %v909_v28 = vrot.slane %v896_v15, 4  ;;  %v897_v30 = vrot.slane %v892_v18, 4 }
 0x23b   : > { %v3192_v16 = vpop.permute.xlu1 %856 }
 0x23c   : > { %v861_v21 = vpop.permute.xlu0 %860  ;;  %v3197_v22 = vpack.i.bf16 %v3192_v16, %v3175_v2 }
 0x23d   : > { %v872_v24 = vrot.slane %v861_v21, 4  ;;  %v876_v25 = vsel %vm873_vm10, %v861_v21, %v875_v17  ;;  %v3204_v26 = vpack.i.bf16 %v867_v4, %v861_v21 }
 0x23e   : > { %v884_v27 = vperm.slane %v876_v25, %v3187_v13  ;;  %2843 = vrot.lane.b32.xlu2 %v3197_v22, %s2973_s19  ;;  %2848 = vrot.lane.b32.xlu0 %v3201_v23, %s2973_s19  ;;  %v929_v25 = vrot.slane %v3180_v3, 4 }
 0x23f   : > { %v874_v29 = vsel %vm873_vm10, %v872_v24, %v848_v0  ;;  %2838 = vrot.lane.b32.xlu1 %v3204_v26, %s2973_s19 }
 0x240   : > { %v880_v32 = vperm.slane %v874_v29, %v3187_v13  ;;  %v911_v33 = vrot.slane %v884_v27, 4  ;;  %v910_v34 = vsel %vm873_vm10, %v909_v28, %v884_v27  ;;  %v941_v27 = vrot.slane %v3189_v14, 4 }
 0x241   : > { %v916_v38 = vperm.slane %v910_v34, %v3211_v31  ;;  %v930_v28 = vsel %vm873_vm10, %v929_v25, %v3175_v2 }
 0x242   : > { %v898_v35 = vsel %vm873_vm10, %v897_v30, %v880_v32  ;;  %v899_v36 = vrot.slane %v880_v32, 4  ;;  %v912_v37 = vsel %vm873_vm10, %v896_v15, %v911_v33  ;;  %v942_v29 = vsel %vm873_vm10, %v941_v27, %v3192_v16 }
 0x243   : > { %v904_v40 = vperm.slane %v898_v35, %v3211_v31  ;;  %v920_v41 = vperm.slane %v912_v37, %v3211_v31  ;;  %v925_v43 = vrot.slane %v916_v38, 4  ;;  %v943_v30 = vrot.slane %v3192_v16, 4 }
 0x244   : > { %v900_v39 = vsel %vm873_vm10, %v892_v18, %v899_v36  ;;  %v931_v32 = vrot.slane %v3175_v2, 4  ;;  %v936_v33 = vperm.slane %v930_v28, %v3187_v13  ;;  %v948_v35 = vperm.slane %v942_v29, %v3187_v13 }
 0x245   : > { %v908_v42 = vperm.slane %v900_v39, %v3211_v31  ;;  %v927_v44 = vrot.slane %v920_v41, 4  ;;  %v921_v45 = vrot.slane %v904_v40, 4  ;;  %v926_v53 = vsel %vm873_vm10, 0.0, %v925_v43 }
 0x246   : > { %v932_v34 = vsel %vm873_vm10, %v3180_v3, %v931_v32  ;;  %v944_v36 = vsel %vm873_vm10, %v3189_v14, %v943_v30 }
 0x247   : > { %v923_v46 = vrot.slane %v908_v42, 4  ;;  %v928_v47 = vsel %vm873_vm10, 0.0, %v927_v44  ;;  %v996_v48 = vsel %vm873_vm10, %v927_v44, %v916_v38  ;;  %v922_v56 = vsel %vm873_vm10, 0.0, %v921_v45 }
 0x248   : > { %v1000_v49 = vperm.slane %v996_v48, %v3187_v13  ;;  %v1001_v50 = vrot.slane %v928_v47, 4  ;;  %v940_v37 = vperm.slane %v932_v34, %v3187_v13  ;;  %v955_v38 = vrot.slane %v936_v33, 4 }
 0x249   : > { %v924_v51 = vsel %vm873_vm10, 0.0, %v923_v46  ;;  %v985_v52 = vsel %vm873_vm10, %v923_v46, %v904_v40  ;;  %v952_v39 = vperm.slane %v944_v36, %v3187_v13  ;;  %v953_v40 = vrot.slane %v948_v35, 4 }
 0x24a   : > { %v989_v54 = vperm.slane %v985_v52, %v3187_v13  ;;  %v990_v55 = vrot.slane %v924_v51, 4  ;;  %v1002_v57 = vsel %vm873_vm10, %v1001_v50, %v926_v53  ;;  %v1021_v58 = vrot.slane %v1000_v49, 4 }
 0x24b   : > { %v1006_v60 = vperm.slane %v1002_v57, %v3187_v13  ;;  %v956_v16 = vsel %vm873_vm10, %v948_v35, %v955_v38  ;;  %v967_v41 = vrot.slane %v940_v37, 4  ;;  %v954_v2 = vsel %vm873_vm10, %v953_v40, %v936_v33 }
 0x24c   : > { %v991_v59 = vsel %vm873_vm10, %v990_v55, %v922_v56  ;;  %v1009_v61 = vrot.slane %v989_v54, 4  ;;  %v964_v42 = vperm.slane %v956_v16, %v3211_v31  ;;  %v965_v43 = vrot.slane %v952_v39, 4 }
 0x24d   : > { %v995_v62 = vperm.slane %v991_v59, %v3187_v13  ;;  %v1022_v63 = vsel %vm873_vm10, %v1006_v60, %v1021_v58  ;;  %v1019_v0 = vrot.slane %v1006_v60, 4  ;;  %v968_v3 = vsel %vm873_vm10, %v952_v39, %v967_v41 }
 0x24e   : > { %v1030_v4 = vperm.slane %v1022_v63, %v3211_v31  ;;  %v960_v44 = vperm.slane %v954_v2, %v3211_v31  ;;  %v966_v14 = vsel %vm873_vm10, %v965_v43, %v940_v37  ;;  %v976_v45 = vperm.slane %v968_v3, %v3211_v31 }
 0x24f   : > { %v1010_v1 = vsel %vm873_vm10, %v995_v62, %v1009_v61  ;;  %v1007_v5 = vrot.slane %v995_v62, 4  ;;  %v1020_v7 = vsel %vm873_vm10, %v1019_v0, %v1000_v49  ;;  %v979_v46 = vrot.slane %v964_v42, 4 }
 0x250   : > { %v1018_v6 = vperm.slane %v1010_v1, %v3211_v31  ;;  %v1035_v9 = vrot.slane %v1030_v4, 4  ;;  %v1026_v11 = vperm.slane %v1020_v7, %v3211_v31  ;;  %v972_v47 = vperm.slane %v966_v14, %v3211_v31 }
 0x251   : > { %v1008_v10 = vsel %vm873_vm10, %v1007_v5, %v989_v54  ;;  %v977_v48 = vrot.slane %v960_v44, 4  ;;  %v980_v50 = vsel %vm873_vm10, 0.0, %v979_v46  ;;  %v983_v51 = vrot.slane %v976_v45, 4 }
 0x252   : > { %v1037_v12 = vrot.slane %v1018_v6, 4  ;;  %v1014_v15 = vperm.slane %v1008_v10, %v3211_v31  ;;  %v3243_v17 = vsel %vm873_vm10, %v1035_v9, %v1018_v6  ;;  %v1031_v18 = vrot.slane %v1026_v11, 4 }
 0x253   : > { %v978_v53 = vsel %vm873_vm10, 0.0, %v977_v48  ;;  %v981_v54 = vrot.slane %v972_v47, 4  ;;  %v1039_v55 = vsel %vm873_vm10, %v979_v46, %v960_v44  ;;  %v1044_v56 = vrot.slane %v980_v50, 4 }
 0x254   : > { %v3246_v19 = vsel %vm873_vm10, %v1030_v4, %v1037_v12  ;;  %v1033_v20 = vrot.slane %v1014_v15, 4  ;;  %v3249_v21 = vsel %vm873_vm10, %v1031_v18, %v1014_v15  ;;  %v3282_v57 = vsel %vm873_vm10, 0.0, %v983_v51 }
 0x255   : > { %v1050_v58 = vsel %vm873_vm10, %v983_v51, %v972_v47  ;;  %v3286_v63 = vperm.slane %v1039_v55, %v3187_v13  ;;  %v3289_v0 = vsel %vm873_vm10, 0.0, %v981_v54  ;;  %v1055_v1 = vrot.slane %v3282_v57, 4 }
 0x256   : > { %v3252_v24 = vsel %vm873_vm10, %v1026_v11, %v1033_v20  ;;  %v3293_v5 = vsel %vm873_vm10, %v1044_v56, %v978_v53  ;;  %v3296_v6 = vperm.slane %v1050_v58, %v3187_v13 }
 0x298   : > { %v2844_v52 = vpop.permute.xlu2 %2843 }
 0x299   : > { %v2846_v59 = vunpack.i.h.bf16 %v2844_v52  ;;  %v2845_v60 = vunpack.i.l.bf16 %v2844_v52 }
 0x29b   : > { %v1195_v7 = vrot.slane %v2846_v59, 4  ;;  %v1183_v9 = vrot.slane %v2845_v60, 4 }
 0x2a8   : > { %v2834_v49 = vpop.permute.xlu0 %2833 }
 0x2a9   : > { %v2836_v61 = vunpack.i.h.bf16 %v2834_v49  ;;  %v2835_v62 = vunpack.i.l.bf16 %v2834_v49 }
 0x2ab   : > { %v1139_v15 = vrot.slane %v2836_v61, 4  ;;  %v1127_v18 = vrot.slane %v2835_v62, 4 }
 0x2b0   : > { %v2849_v4 = vpop.permute.xlu0 %2848 }
 0x2b1   : > { %v2839_v10 = vpop.permute.xlu1 %2838  ;;  %v2851_v11 = vunpack.i.h.bf16 %v2849_v4  ;;  %v2850_v12 = vunpack.i.l.bf16 %v2849_v4 }
 0x2b2   : > { %v2841_v20 = vunpack.i.h.bf16 %v2839_v10  ;;  %v2840_v25 = vunpack.i.l.bf16 %v2839_v10 }
 0x2b3   : > { %v1193_v27 = vrot.slane %v2851_v11, 4  ;;  %v1196_v28 = vsel %vm873_vm10, %v2851_v11, %v1195_v7  ;;  %v1181_v29 = vrot.slane %v2850_v12, 4  ;;  %v1184_v30 = vsel %vm873_vm10, %v2850_v12, %v1183_v9 }
 0x2b4   : > { %v1137_v32 = vrot.slane %v2841_v20, 4  ;;  %v1125_v33 = vrot.slane %v2840_v25, 4  ;;  %v1128_v34 = vsel %vm873_vm10, %v2840_v25, %v1127_v18  ;;  %v1140_v35 = vsel %vm873_vm10, %v2841_v20, %v1139_v15 }
 0x2b5   : > { %v1136_v36 = vperm.slane %v1128_v34, %v3187_v13  ;;  %v1148_v37 = vperm.slane %v1140_v35, %v3187_v13  ;;  %v1194_v38 = vsel %vm873_vm10, %v1193_v27, %v2846_v59  ;;  %v1204_v39 = vperm.slane %v1196_v28, %v3187_v13 }
 0x2b6   : > { %v1126_v40 = vsel %vm873_vm10, %v1125_v33, %v2835_v62  ;;  %v1138_v16 = vsel %vm873_vm10, %v1137_v32, %v2836_v61  ;;  %v1200_v41 = vperm.slane %v1194_v38, %v3187_v13  ;;  %v1182_v2 = vsel %vm873_vm10, %v1181_v29, %v2845_v60 }
 0x2b7   : > { %v1132_v42 = vperm.slane %v1126_v40, %v3187_v13  ;;  %v1144_v43 = vperm.slane %v1138_v16, %v3187_v13  ;;  %v1161_v3 = vrot.slane %v1148_v37, 4  ;;  %v1163_v44 = vrot.slane %v1136_v36, 4 }
 0x2b8   : > { %v1205_v14 = vrot.slane %v1200_v41, 4  ;;  %v1217_v45 = vrot.slane %v1204_v39, 4  ;;  %v1188_v46 = vperm.slane %v1182_v2, %v3187_v13  ;;  %v1192_v47 = vperm.slane %v1184_v30, %v3187_v13 }
 0x2b9   : > { %v1149_v48 = vrot.slane %v1144_v43, 4  ;;  %v1151_v49 = vrot.slane %v1132_v42, 4  ;;  %v1162_v50 = vsel %vm873_vm10, %v1161_v3, %v1136_v36  ;;  %v1164_v51 = vsel %vm873_vm10, %v1148_v37, %v1163_v44 }
 0x2ba   : > { %v1168_v52 = vperm.slane %v1162_v50, %v3211_v31  ;;  %v1172_v53 = vperm.slane %v1164_v51, %v3211_v31  ;;  %v1206_v54 = vsel %vm873_vm10, %v1205_v14, %v1188_v46  ;;  %v1207_v55 = vrot.slane %v1188_v46, 4 }
 0x2bb   : > { %v1150_v56 = vsel %vm873_vm10, %v1149_v48, %v1132_v42  ;;  %v1152_v58 = vsel %vm873_vm10, %v1144_v43, %v1151_v49  ;;  %v1212_v59 = vperm.slane %v1206_v54, %v3211_v31  ;;  %v1218_v60 = vsel %vm873_vm10, %v1217_v45, %v1192_v47 }
 0x2bc   : > { %v1156_v61 = vperm.slane %v1150_v56, %v3211_v31  ;;  %v1160_v62 = vperm.slane %v1152_v58, %v3211_v31  ;;  %v1177_v4 = vrot.slane %v1168_v52, 4  ;;  %v1179_v7 = vrot.slane %v1172_v53, 4 }
 0x2bd   : > { %v1208_v9 = vsel %vm873_vm10, %v1200_v41, %v1207_v55  ;;  %v1219_v10 = vrot.slane %v1192_v47, 4  ;;  %v1224_v11 = vperm.slane %v1218_v60, %v3211_v31  ;;  %v1229_v12 = vrot.slane %v1212_v59, 4 }
 0x2be   : > { %v1173_v15 = vrot.slane %v1156_v61, 4  ;;  %v1175_v18 = vrot.slane %v1160_v62, 4  ;;  %v1178_v20 = vsel %vm873_vm10, 0.0, %v1177_v4  ;;  %v1180_v25 = vsel %vm873_vm10, 0.0, %v1179_v7 }
 0x2bf   : > { %v1253_v27 = vrot.slane %v1180_v25, 4  ;;  %v1216_v28 = vperm.slane %v1208_v9, %v3211_v31  ;;  %v1220_v29 = vsel %vm873_vm10, %v1204_v39, %v1219_v10  ;;  %v1233_v30 = vrot.slane %v1224_v11, 4 }
 0x2c0   : > { %v1176_v32 = vsel %vm873_vm10, 0.0, %v1175_v18  ;;  %v1228_v33 = vperm.slane %v1220_v29, %v3211_v31  ;;  %v1174_v34 = vsel %vm873_vm10, 0.0, %v1173_v15  ;;  %v1237_v35 = vsel %vm873_vm10, %v1175_v18, %v1156_v61 }
 0x2c1   : > { %v1231_v36 = vrot.slane %v1216_v28, 4  ;;  %v1234_v37 = vsel %vm873_vm10, 0.0, %v1233_v30  ;;  %v1241_v38 = vperm.slane %v1237_v35, %v3187_v13  ;;  %v1242_v40 = vrot.slane %v1176_v32, 4 }
 0x2c2   : > { %v1235_v16 = vrot.slane %v1228_v33, 4  ;;  %v1248_v41 = vsel %vm873_vm10, %v1179_v7, %v1168_v52  ;;  %v1254_v39 = vsel %vm873_vm10, %v1253_v27, %v1178_v20  ;;  %v1230_v2 = vsel %vm873_vm10, 0.0, %v1229_v12 }
 0x2c3   : > { %v1232_v42 = vsel %vm873_vm10, 0.0, %v1231_v36  ;;  %v1243_v43 = vsel %vm873_vm10, %v1242_v40, %v1174_v34  ;;  %v1252_v3 = vperm.slane %v1248_v41, %v3187_v13  ;;  %v1258_v44 = vperm.slane %v1254_v39, %v3187_v13 }
 0x2c4   : > { %v1236_v14 = vsel %vm873_vm10, 0.0, %v1235_v16  ;;  %v1296_v45 = vrot.slane %v1232_v42, 4  ;;  %v1302_v46 = vsel %vm873_vm10, %v1235_v16, %v1224_v11  ;;  %v1247_v47 = vperm.slane %v1243_v43, %v3187_v13 }
 0x2c5   : > { %v1307_v48 = vrot.slane %v1236_v14, 4  ;;  %v1261_v49 = vrot.slane %v1241_v38, 4  ;;  %v1273_v50 = vrot.slane %v1252_v3, 4  ;;  %v1291_v51 = vsel %vm873_vm10, %v1231_v36, %v1212_v59 }
 0x2c6   : > { %v1295_v52 = vperm.slane %v1291_v51, %v3187_v13  ;;  %v1297_v53 = vsel %vm873_vm10, %v1296_v45, %v1230_v2  ;;  %v1306_v54 = vperm.slane %v1302_v46, %v3187_v13  ;;  %v1259_v55 = vrot.slane %v1247_v47, 4 }
 0x2c7   : > { %v1262_v56 = vsel %vm873_vm10, %v1247_v47, %v1261_v49  ;;  %v1274_v58 = vsel %vm873_vm10, %v1258_v44, %v1273_v50  ;;  %v1301_v60 = vperm.slane %v1297_v53, %v3187_v13  ;;  %v1308_v61 = vsel %vm873_vm10, %v1307_v48, %v1234_v37 }
 0x2c8   : > { %v1270_v62 = vperm.slane %v1262_v56, %v3211_v31  ;;  %v1282_v4 = vperm.slane %v1274_v58, %v3211_v31  ;;  %v1312_v59 = vperm.slane %v1308_v61, %v3187_v13  ;;  %v1315_v7 = vrot.slane %v1295_v52, 4 }
 0x2c9   : > { %v1327_v9 = vrot.slane %v1306_v54, 4  ;;  %v1260_v10 = vsel %vm873_vm10, %v1259_v55, %v1241_v38  ;;  %v1271_v11 = vrot.slane %v1258_v44, 4  ;;  %v1313_v12 = vrot.slane %v1301_v60, 4 }
 0x2ca   : > { %v1287_v15 = vrot.slane %v1282_v4, 4  ;;  %v1316_v18 = vsel %vm873_vm10, %v1301_v60, %v1315_v7  ;;  %v1266_v20 = vperm.slane %v1260_v10, %v3211_v31  ;;  %v1289_v25 = vrot.slane %v1270_v62, 4 }
 0x2cb   : > { %v1324_v27 = vperm.slane %v1316_v18, %v3211_v31  ;;  %v1328_v28 = vsel %vm873_vm10, %v1312_v59, %v1327_v9  ;;  %v1272_v29 = vsel %vm873_vm10, %v1271_v11, %v1252_v3  ;;  %v1314_v30 = vsel %vm873_vm10, %v1313_v12, %v1295_v52 }
 0x2cc   : > { %v1288_v32 = vsel %vm873_vm10, %v1287_v15, %v1270_v62  ;;  %v1336_v33 = vperm.slane %v1328_v28, %v3211_v31  ;;  %v1278_v34 = vperm.slane %v1272_v29, %v3211_v31  ;;  %v1290_v35 = vsel %vm873_vm10, %v1282_v4, %v1289_v25 }
 0x2cd   : > { %v1347_v36 = vpack.c.bf16 %v1288_v32, %v1288_v32  ;;  %v1343_v37 = vrot.slane %v1324_v27, 4  ;;  %v1348_v38 = vpack.c.bf16 %v1290_v35, %v1290_v35  ;;  %v1320_v40 = vperm.slane %v1314_v30, %v3211_v31 }
 0x2ce   : > { %v1341_v16 = vrot.slane %v1336_v33, 4  ;;  %v1283_v41 = vrot.slane %v1278_v34, 4  ;;  %v1325_v39 = vrot.slane %v1312_v59, 4  ;;  %v1285_v2 = vrot.slane %v1266_v20, 4 }
 0x2cf   : > { %v1648_v42 = vsel %vm1605_vm11, %v1347_v36, 0  ;;  %v1667_v43 = vsel %vm1605_vm11, %v1348_v38, 0  ;;  %v1344_v3 = vsel %vm873_vm10, %v1336_v33, %v1343_v37  ;;  %v1056_v44 = vsel %vm873_vm10, %v1055_v1, %v3289_v0 }
 0x2d0   : > { %1657 = vmatpush.bf16.xpose.msra.mxu3 %v1648_v42  ;;  %v1342_v14 = vsel %vm873_vm10, %v1341_v16, %v1324_v27  ;;  %v1284_v45 = vsel %vm873_vm10, %v1283_v41, %v1266_v20  ;;  %1676 = vmatpush.bf16.xpose.msrb.mxu0 %v1667_v43  ;;  %v1326_v46 = vsel %vm873_vm10, %v1325_v39, %v1306_v54  ;;  %v1339_v47 = vrot.slane %v1320_v40, 4  ;;  %v2888_v41 = vld [vmem:[#allocation3 + $0x3] ss:$0 sm:$0xff]  ;;  %v2889_v42 = vld [vmem:[#allocation3] ss:$0 sm:$0xff] }
 0x2d1   : > { %v1351_v48 = vpack.c.bf16 %v1342_v14, %v1342_v14  ;;  %v1345_v49 = vpack.c.bf16 %v1284_v45, %v1284_v45  ;;  %v1332_v50 = vperm.slane %v1326_v46, %v3211_v31  ;;  %v1352_v51 = vpack.c.bf16 %v1344_v3, %v1344_v3  ;;  %v2890_v14 = vld [vmem:[#allocation3 + $0x2] ss:$0 sm:$0xff] }
 0x2d2   : > { %v1286_v52 = vsel %vm873_vm10, %v1278_v34, %v1285_v2  ;;  %v1060_v57 = vperm.slane %v1056_v44, %v3187_v13  ;;  %v1075_v0 = vrot.slane %v3296_v6, 4  ;;  %v1049_v60 = vperm.slane %v3293_v5, %v3187_v13 }
 0x2d3   : > { %v1724_v1 = vsel %vm1605_vm11, %v1351_v48, 0  ;;  %v1610_v53 = vsel %vm1605_vm11, %v1345_v49, 0  ;;  %v1337_v55 = vrot.slane %v1332_v50, 4  ;;  %v1743_v56 = vsel %vm1605_vm11, %v1352_v51, 0 }
 0x2d4   : > { %1619 = vmatpush.bf16.xpose.msra.mxu1 %v1610_v53  ;;  %v1346_v54 = vpack.c.bf16 %v1286_v52, %v1286_v52  ;;  %v1340_v58 = vsel %vm873_vm10, %v1332_v50, %v1339_v47  ;;  %v1063_v61 = vrot.slane %v3286_v63, 4  ;;  %v1095_v59 = vpack.c.bf16 %v3243_v17, %v3243_v17 }
 0x2d5   : > { %v1338_v62 = vsel %vm873_vm10, %v1337_v55, %v1320_v40  ;;  %v1350_v4 = vpack.c.bf16 %v1340_v58, %v1340_v58  ;;  %v1096_v10 = vpack.c.bf16 %v3246_v19, %v3246_v19  ;;  %v1076_v5 = vsel %vm873_vm10, %v1060_v57, %v1075_v0  ;;  %v2891_v0 = vld [vmem:[#allocation3 + $0x1] ss:$0 sm:$0xff] }
 0x2d6   : > { %v1349_v7 = vpack.c.bf16 %v1338_v62, %v1338_v62  ;;  %v1629_v9 = vsel %vm1605_vm11, %v1346_v54, 0  ;;  %v1073_v12 = vrot.slane %v1060_v57, 4  ;;  %v1064_v17 = vsel %vm873_vm10, %v1049_v60, %v1063_v61  ;;  %v2892_v54 = vld [vmem:[#allocation3 + $0x7] ss:$0 sm:$0xff]  ;;  %v2893_v62 = vld [vmem:[#allocation3 + $0x4] ss:$0 sm:$0xff] }
 0x2d7   : > { %1638 = vmatpush.bf16.xpose.msra.mxu2 %v1629_v9  ;;  %v1705_v11 = vsel %vm1605_vm11, %v1350_v4, 0  ;;  %2774 = vmatmul.msk.bf16.vlgmr.msra.gmra.mxu3 %vm1605_vm11, %v1095_v59  ;;  %v1093_v18 = vpack.c.bf16 %v3249_v21, %v3249_v21  ;;  %v1084_v19 = vperm.slane %v1076_v5, %v3211_v31  ;;  %v1061_v20 = vrot.slane %v1049_v60, 4  ;;  %v2894_v5 = vld [vmem:[#allocation3 + $0x6] ss:$0 sm:$0xff] }
 0x2d8   : > { %1733 = vmatpush.bf16.xpose.msrb.mxu3 %v1724_v1  ;;  %1752 = vmatpush.bf16.xpose.msra.mxu0 %v1743_v56  ;;  %v1686_v15 = vsel %vm1605_vm11, %v1349_v7, 0  ;;  %v1072_v25 = vperm.slane %v1064_v17, %v3211_v31  ;;  %v1074_v27 = vsel %vm873_vm10, %v1073_v12, %v3296_v6  ;;  %v1094_v28 = vpack.c.bf16 %v3252_v24, %v3252_v24 }
 0x2d9   : > { %2775 = vmatmul.msk.bf16.vlgmr.msrb.gmra.mxu0 %vm1605_vm11, %v1096_v10  ;;  %v1089_v29 = vrot.slane %v1084_v19, 4  ;;  %v1062_v30 = vsel %vm873_vm10, %v1061_v20, %v3286_v63  ;;  %v1080_v21 = vperm.slane %v1074_v27, %v3211_v31 }
 0x2da   : > { %v1091_v32 = vrot.slane %v1072_v25, 4  ;;  %v1068_v33 = vperm.slane %v1062_v30, %v3211_v31 }
 0x2db   : > { %2772 = vmatmul.msk.bf16.vlgmr.msra.gmra.mxu1 %vm1605_vm11, %v1093_v18  ;;  %v1090_v34 = vsel %vm873_vm10, %v1089_v29, %v1072_v25  ;;  %v1085_v35 = vrot.slane %v1080_v21, 4  ;;  %v2895_v25 = vld [vmem:[#allocation3 + $0x5] ss:$0 sm:$0xff] }
 0x2dc   : > { %1695 = vmatpush.bf16.xpose.msrb.mxu1 %v1686_v15  ;;  %v1092_v36 = vsel %vm873_vm10, %v1084_v19, %v1091_v32  ;;  %v1099_v6 = vpack.c.bf16 %v1090_v34, %v1090_v34  ;;  %v1087_v37 = vrot.slane %v1068_v33, 4 }
 0x2dd   : > { %v1086_v24 = vsel %vm873_vm10, %v1085_v35, %v1068_v33  ;;  %v1100_v38 = vpack.c.bf16 %v1092_v36, %v1092_v36 }
 0x2de   : > { %2773 = vmatmul.msk.bf16.vlgmr.msra.gmra.mxu2 %vm1605_vm11, %v1094_v28  ;;  %v1097_v63 = vpack.c.bf16 %v1086_v24, %v1086_v24  ;;  %v1088_v40 = vsel %vm873_vm10, %v1080_v21, %v1087_v37 }
 0x2df   : > { %1714 = vmatpush.bf16.xpose.msrb.mxu2 %v1705_v11  ;;  %v1098_v16 = vpack.c.bf16 %v1088_v40, %v1088_v40 }
 0x2e7   : > { %2778 = vmatmul.msk.bf16.vlgmr.msrb.gmra.mxu3 %vm1605_vm11, %v1099_v6 }
 0x2e9   : > { %2779 = vmatmul.msk.bf16.vlgmr.msra.gmra.mxu0 %vm1605_vm11, %v1100_v38 }
 0x2eb   : > { %2776 = vmatmul.msk.bf16.vlgmr.msrb.gmra.mxu1 %vm1605_vm11, %v1097_v63 }
 0x2ee   : > { %2777 = vmatmul.msk.bf16.vlgmr.msrb.gmra.mxu2 %vm1605_vm11, %v1098_v16 }
 0x356   : > { %v1678_v39 = vpop.f32.mrf.mxu0 }
 0x357   : > { %v1761_v2 = vmul.f32 0.35355338, %v1678_v39 }
 0x358   : > { %v1621_v43 = vpop.f32.mrf.mxu1 }
 0x359   : > { %v3425_v3 = vadd.f32 %v2888_v41, %v1761_v2  ;;  %v1758_v44 = vmul.f32 0.35355338, %v1621_v43 }
 0x35a   : > { %v1659_v45 = vpop.f32.mrf.mxu3 }
 0x35b   : > { %v1815_v46 = vsel %vm1605_vm11, %v3425_v3, -inf  ;;  %v1760_v47 = vmul.f32 0.35355338, %v1659_v45  ;;  %v1798_v48 = vadd.f32 %v2889_v42, %v1758_v44 }
 0x35c   : > { %1816 = vmax.xlane.f32.xlu2 %v1815_v46 }
 0x35d   : > { %v1806_v49 = vsel %vm1605_vm11, %v1798_v48, -inf  ;;  %v1800_v51 = vadd.f32 %v2890_v14, %v1760_v47 }
 0x35e   : > { %v1680_v50 = vpop.f32.mrf.mxu0  ;;  %1807 = vmax.xlane.f32.xlu0 %v1806_v49 }
 0x35f   : > { %v1812_v52 = vsel %vm1605_vm11, %v1800_v51, -inf }
 0x360   : > { %v1623_v57 = vpop.f32.mrf.mxu1  ;;  %1813 = vmax.xlane.f32.xlu1 %v1812_v52 }
 0x361   : > { %v1640_v1 = vpop.f32.mrf.mxu2 }
 0x362   : > { %v1759_v53 = vmul.f32 0.35355338, %v1640_v1  ;;  %v1661_v55 = vpop.f32.mrf.mxu3 }
 0x364   : > { %v1799_v56 = vadd.f32 %v2891_v0, %v1759_v53 }
 0x366   : > { %v1754_v58 = vpop.f32.mrf.mxu0  ;;  %v1809_v60 = vsel %vm1605_vm11, %v1799_v56, -inf }
 0x367   : > { %v1765_v61 = vmul.f32 0.35355338, %v1754_v58  ;;  %1810 = vmax.xlane.f32.xlu2 %v1809_v60 }
 0x368   : > { %v1697_v4 = vpop.f32.mrf.mxu1 }
 0x369   : > { %v3432_v59 = vadd.f32 %v2892_v54, %v1765_v61  ;;  %v1642_v7 = vpop.f32.mrf.mxu2  ;;  %v1762_v9 = vmul.f32 0.35355338, %v1697_v4 }
 0x36a   : > { %v1735_v10 = vpop.f32.mrf.mxu3 }
 0x36b   : > { %v1827_v11 = vsel %vm1605_vm11, %v3432_v59, -inf  ;;  %v1764_v12 = vmul.f32 0.35355338, %v1735_v10  ;;  %v1802_v15 = vadd.f32 %v2893_v62, %v1762_v9 }
 0x36c   : > { %1828 = vmax.xlane.f32.xlu1 %v1827_v11 }
 0x36d   : > { %v1818_v17 = vsel %vm1605_vm11, %v1802_v15, -inf  ;;  %v1804_v19 = vadd.f32 %v2894_v5, %v1764_v12 }
 0x36e   : > { %v1756_v18 = vpop.f32.mrf.mxu0  ;;  %1819 = vmax.xlane.f32.xlu0 %v1818_v17 }
 0x36f   : > { %v1824_v30 = vsel %vm1605_vm11, %v1804_v19, -inf }
 0x370   : > { %v1699_v20 = vpop.f32.mrf.mxu1 }
 0x371   : > { %v1716_v27 = vpop.f32.mrf.mxu2 }
 0x372   : > { %v1763_v28 = vmul.f32 0.35355338, %v1716_v27  ;;  %v1737_v29 = vpop.f32.mrf.mxu3 }
 0x374   : > { %1825 = vmax.xlane.f32.xlu1 %v1824_v30  ;;  %v1803_v21 = vadd.f32 %v2895_v25, %v1763_v28 }
 0x376   : > { %v1821_v32 = vsel %vm1605_vm11, %v1803_v21, -inf }
 0x377   : > { %1822 = vmax.xlane.f32.xlu2 %v1821_v32 }
 0x379   : > { %v1718_v33 = vpop.f32.mrf.mxu2 }
 0x382   : > { %2858 = vrot.lane.b32.xlu0 %v3204_v26, %s2975_s30 }
 0x38a   : > { %2868 = vrot.lane.b32.xlu0 %v3201_v23, %s2975_s30 }
 0x38d   : > { %2863 = vrot.lane.b32.xlu1 %v3197_v22, %s2975_s30 }
 0x38f   : > { %2853 = vrot.lane.b32.xlu2 %v3182_v8, %s2975_s30 }
 0x3cf   : > { %v1817_v34 = vpop.xlane.xlu2 %1816 }
 0x3d0   : > { %v1833_v38 = vsub.f32 %v3425_v3, %v1817_v34 }
 0x3d1   : > { %v1808_v35 = vpop.xlane.xlu0 %1807 }
 0x3d2   : > { %v1830_v36 = vsub.f32 %v1798_v48, %v1808_v35  ;;  %v1844_v40 = vmul.f32 1.442695, %v1833_v38 }
 0x3d3   : > { %v1814_v6 = vpop.xlane.xlu1 %1813 }
 0x3d4   : > { %v1838_v37 = vmul.f32 1.442695, %v1830_v36  ;;  %v1832_v24 = vsub.f32 %v1800_v51, %v1814_v6 }
 0x3d6   : > { %2903 = vpow2.f32 %v1838_v37  ;;  %v1842_v63 = vmul.f32 1.442695, %v1832_v24 }
 0x3d8   : > { %2905 = vpow2.f32 %v1842_v63 }
 0x3d9   : > { %2907 = vpow2.f32 %v1844_v40 }
 0x3da   : > { %v1811_v16 = vpop.xlane.xlu2 %1810 }
 0x3db   : > { %v1831_v26 = vsub.f32 %v1799_v56, %v1811_v16 }
 0x3dc   : > { %v3444_v41 = vpop.eup %2903 }
 0x3dd   : > { %v1840_v23 = vmul.f32 1.442695, %v1831_v26  ;;  %v1854_v8 = vsel %vm1605_vm11, %v3444_v41, 0.0 }
 0x3de   : > { %v3448_v22 = vpop.eup %2905  ;;  %1855 = vadd.xlane.f32.xlu0 %v1854_v8 }
 0x3df   : > { %v1829_v39 = vpop.xlane.xlu1 %1828  ;;  %2909 = vpow2.f32 %v1840_v23  ;;  %v1860_v2 = vsel %vm1605_vm11, %v3448_v22, 0.0  ;;  %v3452_v3 = vpop.eup %2907 }
 0x3e0   : > { %1861 = vadd.xlane.f32.xlu2 %v1860_v2  ;;  %v1863_v48 = vsel %vm1605_vm11, %v3452_v3, 0.0  ;;  %v1837_v49 = vsub.f32 %v3432_v59, %v1829_v39 }
 0x3e1   : > { %v1820_v42 = vpop.xlane.xlu0 %1819 }
 0x3e2   : > { %v1834_v43 = vsub.f32 %v1802_v15, %v1820_v42  ;;  %v1852_v0 = vmul.f32 1.442695, %v1837_v49 }
 0x3e4   : > { %v1846_v44 = vmul.f32 1.442695, %v1834_v43 }
 0x3e5   : > { %v3454_v14 = vpop.eup %2909 }
 0x3e6   : > { %2911 = vpow2.f32 %v1846_v44  ;;  %v1857_v45 = vsel %vm1605_vm11, %v3454_v14, 0.0 }
 0x3e7   : > { %v1826_v46 = vpop.xlane.xlu1 %1825  ;;  %1858 = vadd.xlane.f32.xlu1 %v1857_v45 }
 0x3e8   : > { %v1836_v47 = vsub.f32 %v1804_v19, %v1826_v46  ;;  %1864 = vadd.xlane.f32.xlu2 %v1863_v48 }
 0x3ea   : > { %v1850_v50 = vmul.f32 1.442695, %v1836_v47  ;;  %v1823_v51 = vpop.xlane.xlu2 %1822 }
 0x3eb   : > { %v1835_v52 = vsub.f32 %v1803_v21, %v1823_v51 }
 0x3ec   : > { %2913 = vpow2.f32 %v1850_v50  ;;  %v3461_v57 = vpop.eup %2911 }
 0x3ed   : > { %v1848_v1 = vmul.f32 1.442695, %v1835_v52  ;;  %v1866_v53 = vsel %vm1605_vm11, %v3461_v57, 0.0 }
 0x3ef   : > { %2915 = vpow2.f32 %v1848_v1 }
 0x3f0   : > { %2917 = vpow2.f32 %v1852_v0  ;;  %1867 = vadd.xlane.f32.xlu2 %v1866_v53 }
 0x3f2   : > { %v3465_v55 = vpop.eup %2913  ;;  %v2854_v56 = vpop.permute.xlu2 %2853 }
 0x3f3   : > { %v1872_v54 = vsel %vm1605_vm11, %v3465_v55, 0.0  ;;  %v2856_v58 = vunpack.i.h.bf16 %v2854_v56  ;;  %v2855_v60 = vunpack.i.l.bf16 %v2854_v56 }
 0x3f4   : > { %1873 = vadd.xlane.f32.xlu1 %v1872_v54  ;;  %v2859_v61 = vpop.permute.xlu0 %2858 }
 0x3f5   : > { %v3469_v62 = vpop.eup %2915  ;;  %v1391_v4 = vrot.slane %v2856_v58, 4  ;;  %v1379_v59 = vrot.slane %v2855_v60, 4  ;;  %v2861_v7 = vunpack.i.h.bf16 %v2859_v61  ;;  %v2860_v9 = vunpack.i.l.bf16 %v2859_v61 }
 0x3f6   : > { %v3471_v10 = vpop.eup %2917  ;;  %v1869_v11 = vsel %vm1605_vm11, %v3469_v62, 0.0 }
 0x3f7   : > { %v1389_v5 = vrot.slane %v2861_v7, 4  ;;  %v1392_v12 = vsel %vm873_vm10, %v2861_v7, %v1391_v4  ;;  %v1377_v15 = vrot.slane %v2860_v9, 4  ;;  %v1380_v17 = vsel %vm873_vm10, %v2860_v9, %v1379_v59  ;;  %1870 = vadd.xlane.f32.xlu0 %v1869_v11 }
 0x3f8   : > { %v1400_v18 = vperm.slane %v1392_v12, %v3187_v13  ;;  %v1388_v19 = vperm.slane %v1380_v17, %v3187_v13  ;;  %v1875_v27 = vsel %vm1605_vm11, %v3471_v10, 0.0 }
 0x3f9   : > { %v1390_v20 = vsel %vm873_vm10, %v1389_v5, %v2856_v58  ;;  %v1378_v25 = vsel %vm873_vm10, %v1377_v15, %v2855_v60 }
 0x3fa   : > { %v1396_v28 = vperm.slane %v1390_v20, %v3187_v13  ;;  %v1413_v29 = vrot.slane %v1400_v18, 4  ;;  %v1384_v30 = vperm.slane %v1378_v25, %v3187_v13  ;;  %v1415_v21 = vrot.slane %v1388_v19, 4 }
 0x3fc   : > { %1876 = vadd.xlane.f32.xlu1 %v1875_v27  ;;  %v1401_v32 = vrot.slane %v1396_v28, 4  ;;  %v1403_v33 = vrot.slane %v1384_v30, 4  ;;  %v1414_v34 = vsel %vm873_vm10, %v1413_v29, %v1388_v19  ;;  %v1416_v35 = vsel %vm873_vm10, %v1400_v18, %v1415_v21  ;;  %v2869_v36 = vpop.permute.xlu0 %2868 }
 0x3fd   : > { %v1420_v6 = vperm.slane %v1414_v34, %v3211_v31  ;;  %v1424_v37 = vperm.slane %v1416_v35, %v3211_v31  ;;  %v2871_v24 = vunpack.i.h.bf16 %v2869_v36  ;;  %v2870_v38 = vunpack.i.l.bf16 %v2869_v36 }
 0x3fe   : > { %v1402_v63 = vsel %vm873_vm10, %v1401_v32, %v1384_v30  ;;  %v1404_v40 = vsel %vm873_vm10, %v1396_v28, %v1403_v33 }
 0x3ff   : > { %v2864_v16 = vpop.permute.xlu1 %2863  ;;  %v1408_v26 = vperm.slane %v1402_v63, %v3211_v31  ;;  %v1412_v23 = vperm.slane %v1404_v40, %v3211_v31  ;;  %v1429_v8 = vrot.slane %v1420_v6, 4  ;;  %v1431_v39 = vrot.slane %v1424_v37, 4 }
 0x400   : > { %v1445_v2 = vrot.slane %v2871_v24, 4  ;;  %v1433_v42 = vrot.slane %v2870_v38, 4  ;;  %v2866_v43 = vunpack.i.h.bf16 %v2864_v16  ;;  %v2865_v44 = vunpack.i.l.bf16 %v2864_v16 }
 0x401   : > { %v1425_v45 = vrot.slane %v1408_v26, 4  ;;  %v1427_v46 = vrot.slane %v1412_v23, 4  ;;  %v1430_v47 = vsel %vm873_vm10, 0.0, %v1429_v8  ;;  %v1432_v48 = vsel %vm873_vm10, 0.0, %v1431_v39 }
 0x402   : > { %v1500_v49 = vsel %vm873_vm10, %v1431_v39, %v1420_v6  ;;  %v1505_v50 = vrot.slane %v1432_v48, 4  ;;  %v1447_v51 = vrot.slane %v2866_v43, 4  ;;  %v1434_v52 = vsel %vm873_vm10, %v1433_v42, %v2865_v44 }
 0x403   : > { %v1426_v0 = vsel %vm873_vm10, 0.0, %v1425_v45  ;;  %v1428_v1 = vsel %vm873_vm10, 0.0, %v1427_v46  ;;  %v1504_v53 = vperm.slane %v1500_v49, %v3187_v13  ;;  %v1435_v56 = vrot.slane %v2865_v44, 4 }
 0x404   : > { %v1494_v54 = vrot.slane %v1428_v1, 4  ;;  %v1440_v58 = vperm.slane %v1434_v52, %v3187_v13  ;;  %v1446_v60 = vsel %vm873_vm10, %v1445_v2, %v2866_v43  ;;  %v1448_v61 = vsel %vm873_vm10, %v2871_v24, %v1447_v51 }
 0x405   : > { %v1436_v4 = vsel %vm873_vm10, %v2870_v38, %v1435_v56  ;;  %v1452_v59 = vperm.slane %v1446_v60, %v3187_v13  ;;  %v1456_v7 = vperm.slane %v1448_v61, %v3187_v13  ;;  %v1489_v9 = vsel %vm873_vm10, %v1427_v46, %v1408_v26 }
 0x406   : > { %v1444_v11 = vperm.slane %v1436_v4, %v3187_v13  ;;  %v1459_v5 = vrot.slane %v1440_v58, 4  ;;  %v1493_v12 = vperm.slane %v1489_v9, %v3187_v13  ;;  %v1495_v15 = vsel %vm873_vm10, %v1494_v54, %v1426_v0 }
 0x407   : > { %v1457_v17 = vrot.slane %v1452_v59, 4  ;;  %v1469_v18 = vrot.slane %v1456_v7, 4  ;;  %v1499_v19 = vperm.slane %v1495_v15, %v3187_v13  ;;  %v1506_v20 = vsel %vm873_vm10, %v1505_v50, %v1430_v47 }
 0x408   : > { %v1460_v25 = vsel %vm873_vm10, %v1452_v59, %v1459_v5  ;;  %v1471_v27 = vrot.slane %v1444_v11, 4  ;;  %v1510_v28 = vperm.slane %v1506_v20, %v3187_v13  ;;  %v1513_v29 = vrot.slane %v1493_v12, 4 }
 0x409   : > { %v1458_v30 = vsel %vm873_vm10, %v1457_v17, %v1440_v58  ;;  %v1468_v21 = vperm.slane %v1460_v25, %v3211_v31  ;;  %v1470_v32 = vsel %vm873_vm10, %v1469_v18, %v1444_v11  ;;  %v1525_v33 = vrot.slane %v1504_v53, 4 }
 0x40a   : > { %v1464_v34 = vperm.slane %v1458_v30, %v3211_v31  ;;  %v1472_v35 = vsel %vm873_vm10, %v1456_v7, %v1471_v27  ;;  %v1476_v36 = vperm.slane %v1470_v32, %v3211_v31  ;;  %v1514_v6 = vsel %vm873_vm10, %v1499_v19, %v1513_v29 }
 0x40b   : > { %v1480_v37 = vperm.slane %v1472_v35, %v3211_v31  ;;  %v1483_v24 = vrot.slane %v1468_v21, 4  ;;  %v1522_v38 = vperm.slane %v1514_v6, %v3211_v31  ;;  %v1526_v63 = vsel %vm873_vm10, %v1510_v28, %v1525_v33 }
 0x40c   : > { %v1481_v40 = vrot.slane %v1464_v34, 4  ;;  %v1485_v16 = vrot.slane %v1476_v36, 4  ;;  %v1534_v26 = vperm.slane %v1526_v63, %v3211_v31  ;;  %v1511_v23 = vrot.slane %v1499_v19, 4 }
 0x40d   : > { %v1484_v8 = vsel %vm873_vm10, 0.0, %v1483_v24  ;;  %v1487_v39 = vrot.slane %v1480_v37, 4  ;;  %v1543_v2 = vsel %vm873_vm10, %v1483_v24, %v1464_v34  ;;  %v1523_v42 = vrot.slane %v1510_v28, 4 }
 0x40e   : > { %v1482_v43 = vsel %vm873_vm10, 0.0, %v1481_v40  ;;  %v1486_v44 = vsel %vm873_vm10, 0.0, %v1485_v16  ;;  %v1547_v45 = vperm.slane %v1543_v2, %v3187_v13  ;;  %v1548_v46 = vrot.slane %v1484_v8, 4 }
 0x40f   : > { %v1488_v47 = vsel %vm873_vm10, 0.0, %v1487_v39  ;;  %v1539_v48 = vrot.slane %v1534_v26, 4  ;;  %v1512_v49 = vsel %vm873_vm10, %v1511_v23, %v1493_v12  ;;  %v1524_v50 = vsel %vm873_vm10, %v1523_v42, %v1504_v53 }
 0x410   : > { %v1559_v51 = vrot.slane %v1488_v47, 4  ;;  %v1518_v52 = vperm.slane %v1512_v49, %v3211_v31  ;;  %v1530_v0 = vperm.slane %v1524_v50, %v3211_v31  ;;  %v1541_v1 = vrot.slane %v1522_v38, 4 }
 0x411   : > { %v1540_v56 = vsel %vm873_vm10, %v1539_v48, %v1522_v38  ;;  %v1549_v54 = vsel %vm873_vm10, %v1548_v46, %v1482_v43  ;;  %v1554_v58 = vsel %vm873_vm10, %v1487_v39, %v1476_v36  ;;  %v1567_v60 = vrot.slane %v1547_v45, 4 }
 0x412   : > { %v1599_v61 = vpack.c.bf16 %v1540_v56, %v1540_v56  ;;  %v1535_v4 = vrot.slane %v1530_v0, 4  ;;  %v1542_v59 = vsel %vm873_vm10, %v1534_v26, %v1541_v1  ;;  %v1537_v7 = vrot.slane %v1518_v52, 4 }
 0x413   : > { %v1600_v9 = vpack.c.bf16 %v1542_v59, %v1542_v59  ;;  %v1553_v53 = vperm.slane %v1549_v54, %v3187_v13  ;;  %v1558_v11 = vperm.slane %v1554_v58, %v3187_v13  ;;  %v1560_v5 = vsel %vm873_vm10, %v1559_v51, %v1486_v44 }
 0x414   : > { %v1945_v12 = vsel %vm1905_vm12, %v1599_v61, 0  ;;  %v1536_v15 = vsel %vm873_vm10, %v1535_v4, %v1518_v52  ;;  %v1538_v17 = vsel %vm873_vm10, %v1530_v0, %v1537_v7  ;;  %v1564_v18 = vperm.slane %v1560_v5, %v3187_v13 }
 0x415   : > { %1954 = vmatpush.bf16.msra.mxu3 %v1945_v12  ;;  %v1597_v19 = vpack.c.bf16 %v1536_v15, %v1536_v15  ;;  %v1964_v20 = vsel %vm1905_vm12, %v1600_v9, 0  ;;  %v1598_v25 = vpack.c.bf16 %v1538_v17, %v1538_v17  ;;  %v1568_v27 = vsel %vm873_vm10, %v1553_v53, %v1567_v60 }
 0x416   : > { %1973 = vmatpush.bf16.msrb.mxu0 %v1964_v20  ;;  %v1576_v28 = vperm.slane %v1568_v27, %v3211_v31  ;;  %v1579_v29 = vrot.slane %v1558_v11, 4  ;;  %v1565_v30 = vrot.slane %v1553_v53, 4  ;;  %v1577_v21 = vrot.slane %v1564_v18, 4 }
 0x417   : > { %v1907_v32 = vsel %vm1905_vm12, %v1597_v19, 0  ;;  %v1926_v33 = vsel %vm1905_vm12, %v1598_v25, 0 }
 0x418   : > { %1916 = vmatpush.bf16.msra.mxu1 %v1907_v32  ;;  %1935 = vmatpush.bf16.msra.mxu2 %v1926_v33  ;;  %v1580_v34 = vsel %vm873_vm10, %v1564_v18, %v1579_v29  ;;  %v1595_v35 = vrot.slane %v1576_v28, 4  ;;  %v1566_v36 = vsel %vm873_vm10, %v1565_v30, %v1547_v45  ;;  %v1578_v6 = vsel %vm873_vm10, %v1577_v21, %v1558_v11 }
 0x419   : > { %v1588_v37 = vperm.slane %v1580_v34, %v3211_v31  ;;  %v1572_v24 = vperm.slane %v1566_v36, %v3211_v31  ;;  %v1584_v38 = vperm.slane %v1578_v6, %v3211_v31 }
 0x41b   : > { %v1596_v63 = vsel %vm873_vm10, %v1588_v37, %v1595_v35  ;;  %v1591_v40 = vrot.slane %v1572_v24, 4  ;;  %v1593_v16 = vrot.slane %v1588_v37, 4  ;;  %v1589_v26 = vrot.slane %v1584_v38, 4 }
 0x41c   : > { %v1604_v23 = vpack.c.bf16 %v1596_v63, %v1596_v63 }
 0x41d   : > { %v1592_v8 = vsel %vm873_vm10, %v1584_v38, %v1591_v40  ;;  %v1594_v39 = vsel %vm873_vm10, %v1593_v16, %v1576_v28  ;;  %v1590_v2 = vsel %vm873_vm10, %v1589_v26, %v1572_v24 }
 0x41e   : > { %v2040_v42 = vsel %vm1905_vm12, %v1604_v23, 0  ;;  %v1602_v43 = vpack.c.bf16 %v1592_v8, %v1592_v8  ;;  %v1603_v44 = vpack.c.bf16 %v1594_v39, %v1594_v39  ;;  %v1601_v45 = vpack.c.bf16 %v1590_v2, %v1590_v2 }
 0x41f   : > { %2049 = vmatpush.bf16.msra.mxu0 %v2040_v42 }
 0x420   : > { %v2002_v46 = vsel %vm1905_vm12, %v1602_v43, 0  ;;  %v2021_v47 = vsel %vm1905_vm12, %v1603_v44, 0  ;;  %v1983_v48 = vsel %vm1905_vm12, %v1601_v45, 0 }
 0x421   : > { %2011 = vmatpush.bf16.msrb.mxu2 %v2002_v46  ;;  %2030 = vmatpush.bf16.msrb.mxu3 %v2021_v47 }
 0x422   : > { %1992 = vmatpush.bf16.msrb.mxu1 %v1983_v48 }
 0x451   : > { %v1856_v49 = vpop.xlane.xlu0 %1855 }
 0x452   : > { %2919 = vrcp.f32 %v1856_v49 }
 0x453   : > { %v1862_v50 = vpop.xlane.xlu2 %1861 }
 0x454   : > { %2921 = vrcp.f32 %v1862_v50 }
 0x458   : > { %v2920_v51 = vpop.eup %2919 }
 0x459   : > { %v1886_v52 = vmul.f32 %v2920_v51, %v3444_v41 }
 0x45a   : > { %v2922_v0 = vpop.eup %2921  ;;  %v1859_v1 = vpop.xlane.xlu1 %1858 }
 0x45b   : > { %v1894_v56 = vpack.c.bf16 %v1886_v52, %v1886_v52  ;;  %v1888_v54 = vmul.f32 %v2922_v0, %v3448_v22  ;;  %2923 = vrcp.f32 %v1859_v1  ;;  %v1865_v58 = vpop.xlane.xlu2 %1864 }
 0x45c   : > { %2925 = vrcp.f32 %v1865_v58 }
 0x45d   : > { %v1896_v60 = vpack.c.bf16 %v1888_v54, %v1888_v54  ;;  %2780 = vmatmul.msk.bf16.vlgmr.msra.gmra.mxu1 %vm1605_vm11, %v1894_v56 }
 0x45f   : > { %2782 = vmatmul.msk.bf16.vlgmr.msra.gmra.mxu3 %vm1605_vm11, %v1896_v60 }
 0x461   : > { %v2924_v61 = vpop.eup %2923 }
 0x462   : > { %v2926_v4 = vpop.eup %2925  ;;  %v1887_v59 = vmul.f32 %v2924_v61, %v3454_v14 }
 0x463   : > { %v1889_v7 = vmul.f32 %v2926_v4, %v3452_v3  ;;  %v1868_v41 = vpop.xlane.xlu2 %1867 }
 0x464   : > { %v1895_v9 = vpack.c.bf16 %v1887_v59, %v1887_v59  ;;  %2927 = vrcp.f32 %v1868_v41 }
 0x465   : > { %v1897_v53 = vpack.c.bf16 %v1889_v7, %v1889_v7 }
 0x466   : > { %2781 = vmatmul.msk.bf16.vlgmr.msra.gmra.mxu2 %vm1605_vm11, %v1895_v9 }
 0x467   : > { %v1874_v22 = vpop.xlane.xlu1 %1873  ;;  %2783 = vmatmul.msk.bf16.vlgmr.msrb.gmra.mxu0 %vm1605_vm11, %v1897_v53 }
 0x468   : > { %2929 = vrcp.f32 %v1874_v22 }
 0x46a   : > { %v2928_v11 = vpop.eup %2927  ;;  %v1871_v5 = vpop.xlane.xlu0 %1870 }
 0x46b   : > { %v1890_v12 = vmul.f32 %v2928_v11, %v3461_v57  ;;  %2931 = vrcp.f32 %v1871_v5 }
 0x46d   : > { %v1898_v17 = vpack.c.bf16 %v1890_v12, %v1890_v12 }
 0x46e   : > { %v2930_v15 = vpop.eup %2929 }
 0x46f   : > { %v1892_v14 = vmul.f32 %v2930_v15, %v3465_v55  ;;  %v1877_v3 = vpop.xlane.xlu1 %1876  ;;  %2784 = vmatmul.msk.bf16.vlgmr.msrb.gmra.mxu1 %vm1605_vm11, %v1898_v17 }
 0x470   : > { %2933 = vrcp.f32 %v1877_v3 }
 0x471   : > { %v1900_v18 = vpack.c.bf16 %v1892_v14, %v1892_v14  ;;  %v2932_v19 = vpop.eup %2931 }
 0x472   : > { %v1891_v20 = vmul.f32 %v2932_v19, %v3469_v62 }
 0x473   : > { %2786 = vmatmul.msk.bf16.vlgmr.msrb.gmra.mxu3 %vm1605_vm11, %v1900_v18 }
 0x474   : > { %v1899_v25 = vpack.c.bf16 %v1891_v20, %v1891_v20 }
 0x476   : > { %v2934_v27 = vpop.eup %2933  ;;  %2785 = vmatmul.msk.bf16.vlgmr.msrb.gmra.mxu2 %vm1605_vm11, %v1899_v25 }
 0x477   : > { %v1893_v28 = vmul.f32 %v2934_v27, %v3471_v10 }
 0x479   : > { %v1901_v57 = vpack.c.bf16 %v1893_v28, %v1893_v28 }
 0x47b   : > { %2787 = vmatmul.msk.bf16.vlgmr.msra.gmra.mxu0 %vm1605_vm11, %v1901_v57 }
 0x4da   : > { %v1918_v55 = vpop.f32.mrf.mxu1 }
 0x4db   : > { %v2057_v32 = vrot.slane %v1918_v55, 4 }
 0x4e2   : > { %v1920_v29 = vpop.f32.mrf.mxu1  ;;  %v1956_v30 = vpop.f32.mrf.mxu3 }
 0x4e3   : > { %v2055_v21 = vrot.slane %v1956_v30, 4  ;;  %v2058_v62 = vsel %vm873_vm10, %v1956_v30, %v2057_v32 }
 0x4e4   : > { %v1975_v33 = vpop.f32.mrf.mxu0  ;;  %v2066_v10 = vperm.slane %v2058_v62, %v3187_v13 }
 0x4e5   : > { %v2056_v34 = vsel %vm873_vm10, %v2055_v21, %v1918_v55  ;;  %v2067_v36 = vrot.slane %v1975_v33, 4 }
 0x4e6   : > { %v2062_v35 = vperm.slane %v2056_v34, %v3187_v13  ;;  %v2093_v8 = vrot.slane %v2066_v10, 4 }
 0x4e8   : > { %v2081_v6 = vrot.slane %v2062_v35, 4 }
 0x4e9   : > { %v1937_v37 = vpop.f32.mrf.mxu2 }
 0x4ea   : > { %v2068_v24 = vsel %vm873_vm10, %v2067_v36, %v1937_v37  ;;  %v2069_v38 = vrot.slane %v1937_v37, 4  ;;  %v1958_v63 = vpop.f32.mrf.mxu3 }
 0x4eb   : > { %v2074_v40 = vperm.slane %v2068_v24, %v3187_v13 }
 0x4ec   : > { %v2070_v16 = vsel %vm873_vm10, %v1975_v33, %v2069_v38  ;;  %v1977_v26 = vpop.f32.mrf.mxu0  ;;  %v1994_v23 = vpop.f32.mrf.mxu1 }
 0x4ed   : > { %v2078_v39 = vperm.slane %v2070_v16, %v3187_v13  ;;  %v2079_v2 = vrot.slane %v2074_v40, 4  ;;  %v2082_v42 = vsel %vm873_vm10, %v2074_v40, %v2081_v6  ;;  %v2113_v59 = vrot.slane %v1994_v23, 4 }
 0x4ee   : > { %v2090_v43 = vperm.slane %v2082_v42, %v3211_v31 }
 0x4ef   : > { %v2080_v44 = vsel %vm873_vm10, %v2079_v2, %v2062_v35  ;;  %v2091_v45 = vrot.slane %v2078_v39, 4  ;;  %v2094_v46 = vsel %vm873_vm10, %v2078_v39, %v2093_v8 }
 0x4f0   : > { %v2086_v47 = vperm.slane %v2080_v44, %v3211_v31  ;;  %v2102_v48 = vperm.slane %v2094_v46, %v3211_v31  ;;  %v2105_v49 = vrot.slane %v2090_v43, 4 }
 0x4f1   : > { %v2092_v50 = vsel %vm873_vm10, %v2091_v45, %v2066_v10  ;;  %v1939_v51 = vpop.f32.mrf.mxu2 }
 0x4f2   : > { %v2098_v52 = vperm.slane %v2092_v50, %v3211_v31  ;;  %v2103_v0 = vrot.slane %v2086_v47, 4  ;;  %v2106_v1 = vsel %vm873_vm10, 0.0, %v2105_v49  ;;  %v2109_v56 = vrot.slane %v2102_v48, 4 }
 0x4f3   : > { %v2167_v54 = vsel %vm873_vm10, %v2105_v49, %v2086_v47  ;;  %v2172_v58 = vrot.slane %v2106_v1, 4 }
 0x4f4   : > { %v2104_v60 = vsel %vm873_vm10, 0.0, %v2103_v0  ;;  %v2107_v61 = vrot.slane %v2098_v52, 4  ;;  %v2110_v4 = vsel %vm873_vm10, 0.0, %v2109_v56  ;;  %v1996_v7 = vpop.f32.mrf.mxu1  ;;  %v2171_v41 = vperm.slane %v2167_v54, %v3187_v13 }
 0x4f5   : > { %v2173_v9 = vsel %vm873_vm10, %v2172_v58, %v2104_v60  ;;  %v2178_v53 = vsel %vm873_vm10, %v2109_v56, %v2098_v52  ;;  %v2183_v22 = vrot.slane %v2110_v4, 4 }
 0x4f6   : > { %v2032_v11 = vpop.f32.mrf.mxu3  ;;  %v2108_v5 = vsel %vm873_vm10, 0.0, %v2107_v61  ;;  %v2182_v12 = vperm.slane %v2178_v53, %v3187_v13  ;;  %v2177_v18 = vperm.slane %v2173_v9, %v3187_v13  ;;  %v2191_v30 = vrot.slane %v2171_v41, 4 }
 0x4f7   : > { %v2111_v15 = vrot.slane %v2032_v11, 4  ;;  %v2114_v17 = vsel %vm873_vm10, %v2032_v11, %v2113_v59  ;;  %v2184_v19 = vsel %vm873_vm10, %v2183_v22, %v2108_v5 }
 0x4f8   : > { %v2122_v14 = vperm.slane %v2114_v17, %v3187_v13  ;;  %v2051_v3 = vpop.f32.mrf.mxu0  ;;  %v2188_v27 = vperm.slane %v2184_v19, %v3187_v13  ;;  %v2203_v21 = vrot.slane %v2182_v12, 4  ;;  %v2189_v62 = vrot.slane %v2177_v18, 4 }
 0x4f9   : > { %v2112_v20 = vsel %vm873_vm10, %v2111_v15, %v1994_v23  ;;  %v2123_v25 = vrot.slane %v2051_v3, 4  ;;  %v2013_v28 = vpop.f32.mrf.mxu2  ;;  %v2192_v63 = vsel %vm873_vm10, %v2177_v18, %v2191_v30 }
 0x4fa   : > { %v2118_v57 = vperm.slane %v2112_v20, %v3187_v13  ;;  %v2125_v55 = vrot.slane %v2013_v28, 4  ;;  %v2149_v33 = vrot.slane %v2122_v14, 4  ;;  %v2201_v36 = vrot.slane %v2188_v27, 4 }
 0x4fb   : > { %v2124_v29 = vsel %vm873_vm10, %v2123_v25, %v2013_v28  ;;  %v2204_v40 = vsel %vm873_vm10, %v2188_v27, %v2203_v21  ;;  %v2190_v2 = vsel %vm873_vm10, %v2189_v62, %v2171_v41  ;;  %v2200_v48 = vperm.slane %v2192_v63, %v3211_v31 }
 0x4fc   : > { %v2137_v32 = vrot.slane %v2118_v57, 4  ;;  %v2130_v34 = vperm.slane %v2124_v29, %v3187_v13  ;;  %v2126_v35 = vsel %vm873_vm10, %v2051_v3, %v2125_v55  ;;  %v2202_v16 = vsel %vm873_vm10, %v2201_v36, %v2182_v12 }
 0x4fd   : > { %v2134_v10 = vperm.slane %v2126_v35, %v3187_v13  ;;  %v2208_v45 = vperm.slane %v2202_v16, %v3211_v31  ;;  %v2212_v49 = vperm.slane %v2204_v40, %v3211_v31  ;;  %v2196_v54 = vperm.slane %v2190_v2, %v3211_v31  ;;  %v2310_v16 = vld [vmem:[%s3803_s21 + $0x10] sm:$0xff] }
 0x4fe   : > { %v2135_v6 = vrot.slane %v2130_v34, 4  ;;  %v2138_v37 = vsel %vm873_vm10, %v2130_v34, %v2137_v32  ;;  %v2034_v24 = vpop.f32.mrf.mxu3  ;;  %v2219_v20 = vrot.slane %v2200_v48, 4 }
 0x4ff   : > { %v2146_v38 = vperm.slane %v2138_v37, %v3211_v31  ;;  %v2147_v23 = vrot.slane %v2134_v10, 4  ;;  %v2150_v8 = vsel %vm873_vm10, %v2134_v10, %v2149_v33  ;;  %v2213_v58 = vrot.slane %v2208_v45, 4 }
 0x500   : > { %v2136_v26 = vsel %vm873_vm10, %v2135_v6, %v2118_v57  ;;  %v2053_v39 = vpop.f32.mrf.mxu0  ;;  %v2158_v43 = vperm.slane %v2150_v8, %v3211_v31  ;;  %v2217_v18 = vrot.slane %v2212_v49, 4  ;;  %v2215_v25 = vrot.slane %v2196_v54, 4 }
 0x501   : > { %v2142_v42 = vperm.slane %v2136_v26, %v3211_v31  ;;  %v2161_v44 = vrot.slane %v2146_v38, 4  ;;  %v2148_v46 = vsel %vm873_vm10, %v2147_v23, %v2122_v14  ;;  %v2015_v47 = vpop.f32.mrf.mxu2  ;;  %v2214_v5 = vsel %vm873_vm10, %v2213_v58, %v2196_v54  ;;  %v2311_v26 = vld [vmem:[%s3803_s21 + $0x18] sm:$0xff]  ;;  %v2308_v23 = vld [vmem:[%s3803_s21] sm:$0xff]  ;;  %v2309_v39 = vld [vmem:[%s3803_s21 + $0x8] sm:$0xff]  ;;  %s3806_s21 = scalar_lea.vmem %s3772_s9, %s3087_s29 }
 0x502   : > { %v2154_v50 = vperm.slane %v2148_v46, %v3211_v31  ;;  %v2165_v0 = vrot.slane %v2158_v43, 4  ;;  %v2218_v62 = vsel %vm873_vm10, %v2217_v18, %v2200_v48  ;;  %v2220_v35 = vsel %vm873_vm10, %v2212_v49, %v2219_v20 }
 0x503   : > { %v2159_v51 = vrot.slane %v2142_v42, 4  ;;  %v2162_v52 = vsel %vm873_vm10, 0.0, %v2161_v44  ;;  %v2221_v1 = vsel %vm873_vm10, %v2161_v44, %v2142_v42  ;;  %v2216_v10 = vsel %vm873_vm10, %v2208_v45, %v2215_v25 }
 0x504   : > { %v2226_v56 = vrot.slane %v2162_v52, 4  ;;  %v2163_v60 = vrot.slane %v2154_v50, 4  ;;  %v2166_v61 = vsel %vm873_vm10, 0.0, %v2165_v0  ;;  %v2232_v4 = vsel %vm873_vm10, %v2165_v0, %v2154_v50 }
 0x505   : > { %v2160_v59 = vsel %vm873_vm10, 0.0, %v2159_v51  ;;  %v2236_v7 = vperm.slane %v2232_v4, %v3187_v13  ;;  %v2237_v41 = vrot.slane %v2166_v61, 4  ;;  %v2225_v9 = vperm.slane %v2221_v1, %v3187_v13 }
 0x506   : > { %v2227_v53 = vsel %vm873_vm10, %v2226_v56, %v2160_v59  ;;  %v2164_v22 = vsel %vm873_vm10, 0.0, %v2163_v60  ;;  %v2313_v8 = vpack.c.bf16 %v2311_v26, %v2310_v16  ;;  %v2312_v2 = vpack.c.bf16 %v2309_v39, %v2308_v23  ;;  %v2896_v60 = vld [vmem:[%s3804_s17] ss:$0 sm:$0xff] }
 0x507   : > { %v2231_v11 = vperm.slane %v2227_v53, %v3187_v13  ;;  %v2238_v12 = vsel %vm873_vm10, %v2237_v41, %v2164_v22  ;;  %v2257_v15 = vrot.slane %v2236_v7, 4  ;;  %v2245_v17 = vrot.slane %v2225_v9, 4  ;;  %v2949_v59 = vld [vmem:[#allocation2] sm:$0xff]  ;;  %v2950_v22 = vld [vmem:[#allocation2 + $0x8] sm:$0xff] }
 0x508   : > { %v2242_v14 = vperm.slane %v2238_v12, %v3187_v13  ;;  %2327 = vmatpush.bf16.msra.mxu1 %v2313_v8  ;;  %v2979_v12 = vmov 32.0  }
 0x509   : > { %v2243_v3 = vrot.slane %v2231_v11, 4  ;;  %v2246_v19 = vsel %vm873_vm10, %v2231_v11, %v2245_v17  ;;  %2935 = vrcp.f32 %v2979_v12  ;;  %v2447_v12 = vld [vmem:[%s3129_s27] sm:$0xff] }
 0x50a   : > { %v2254_v27 = vperm.slane %v2246_v19, %v3211_v31  ;;  %v2258_v28 = vsel %vm873_vm10, %v2242_v14, %v2257_v15  ;;  %v2255_v55 = vrot.slane %v2242_v14, 4 }
 0x50b   : > { %v2244_v57 = vsel %vm873_vm10, %v2243_v3, %v2225_v9  ;;  %v2266_v29 = vperm.slane %v2258_v28, %v3211_v31 }
 0x50c   : > { %v2250_v30 = vperm.slane %v2244_v57, %v3211_v31  ;;  %v2273_v21 = vrot.slane %v2254_v27, 4  ;;  %v2256_v13 = vsel %vm873_vm10, %v2255_v55, %v2236_v7  ;;  %2328 = vmatpush.bf16.msra.mxu1 %v2312_v2 }
 0x50d   : > { %v2271_v32 = vrot.slane %v2266_v29, 4  ;;  %v2262_v33 = vperm.slane %v2256_v13, %v3211_v31 }
 0x50e   : > { %v2269_v34 = vrot.slane %v2250_v30, 4  ;;  %v2274_v36 = vsel %vm873_vm10, %v2266_v29, %v2273_v21 }
 0x50f   : > { %v2272_v6 = vsel %vm873_vm10, %v2271_v32, %v2254_v27  ;;  %v2882_v37 = vpack.i.bf16 %v2274_v36, %v2220_v35  ;;  %v2267_v24 = vrot.slane %v2262_v33, 4  ;;  %v2936_v15 = vpop.eup %2935  ;;  %v2404_v35 = vld [vmem:[%s3119_s4 + $0x18] sm:$0xff]  ;;  %v2401_v36 = vld [vmem:[%s3119_s4] sm:$0xff] }
 0x510   : > { %v2270_v38 = vsel %vm873_vm10, %v2262_v33, %v2269_v34  ;;  %v2877_v31 = vpack.i.bf16 %v2272_v6, %v2218_v62  ;;  %v2346_v17 = vmul.f32 32.0, %v2936_v15  ;;  %vm2350_vm15 = vweird.f32 %v2936_v15  ;;  %v2403_v62 = vld [vmem:[%s3119_s4 + $0x10] sm:$0xff]  ;;  %v2402_v6 = vld [vmem:[%s3119_s4 + $0x8] sm:$0xff] }
 0x511   : > { %v2872_v63 = vpack.i.bf16 %v2270_v38, %v2216_v10  ;;  %2883 = vrot.lane.b32.xlu1 %v2882_v37, %s2976_s2  ;;  %v2268_v40 = vsel %vm873_vm10, %v2267_v24, %v2250_v30  ;;  %v2406_v10 = vpack.c.bf16 %v2404_v35, %v2403_v62  ;;  %v2405_v37 = vpack.c.bf16 %v2402_v6, %v2401_v36  ;;  %s3808_s2 = sld [smem:[#allocation12_spill]] (!%p2791_p5) }
 0x512   : > { %2878 = vrot.lane.b32.xlu2 %v2877_v31, %s2977_s23  ;;  %v2347_v14 = vsub.f32 1.0, %v2346_v17 }
 0x513   : > { %2873 = vrot.lane.b32.xlu0 %v2872_v63, %s2978_s24  ;;  %2420 = vmatpush.bf16.msra.mxu2 %v2406_v10 }
 0x514   : > { %v2348_v3 = vmul.f32 %v2936_v15, %v2347_v14 }
 0x516   : > { %v2349_v18 = vadd.f32 %v2936_v15, %v2348_v3 }
 0x517   : > { %2421 = vmatpush.bf16.msra.mxu2 %v2405_v37  ;;  %v2900_v37 = vld [vmem:[%s726_s0] ss:$0 sm:$0xff] }
 0x518   : > { %v3675_v19 = vsel %vm2350_vm15, %v2936_v15, %v2349_v18  ;;  %v2448_v15 = vld [vmem:[%s3129_s27 + $0x8] sm:$0xff] }
 0x519   : > { %v2455_v14 = vpack.c.bf16 %v2448_v15, %v2447_v12 }
 0x56c   : > { %v2879_v42 = vpop.permute.xlu2 %2878 }
 0x56d   : > { %v2881_v47 = vunpack.i.h.bf16 %v2879_v42  ;;  %v2880_v48 = vunpack.i.l.bf16 %v2879_v42 }
 0x583   : > { %v2884_v43 = vpop.permute.xlu1 %2883 }
 0x584   : > { %v2886_v49 = vunpack.i.h.bf16 %v2884_v43  ;;  %v2885_v50 = vunpack.i.l.bf16 %v2884_v43 }
 0x585   : > { %v2874_v44 = vpop.permute.xlu0 %2873 }
 0x586   : > { %v2876_v45 = vunpack.i.h.bf16 %v2874_v44  ;;  %v2875_v46 = vunpack.i.l.bf16 %v2874_v44 }
 0x588   : > { %v2299_v51 = vsel %vm1605_vm11, %v2214_v5, %v2875_v46  ;;  %v2300_v52 = vsel %vm1605_vm11, %v2268_v40, %v2876_v45  ;;  %v2897_v46 = vld [vmem:[%s3805_s22] ss:$0 sm:$0xff] }
 0x589   : > { %v2302_v0 = vsel %vm2301_vm13, %v2299_v51, %v2880_v48  ;;  %v2303_v1 = vsel %vm2301_vm13, %v2300_v52, %v2881_v47 }
 0x58a   : > { %v2305_v56 = vsel %vm2304_vm14, %v2302_v0, %v2885_v50  ;;  %v2306_v54 = vsel %vm2304_vm14, %v2303_v1, %v2886_v49  ;;  %v2898_v50 = vld [vmem:[%s3806_s21] ss:$0 sm:$0xff] }
 0x58b   : > { %v2307_v58 = vpack.c.bf16 %v2306_v54, %v2305_v56 }
 0x58d   : > { %2788 = vmatmul.msk.bf16.vlgmr.msra.gmra.mxu1 %vm834_vm9, %v2307_v58  ;;  %v2453_v58 = vld [vmem:[%s3129_s27 + $0x30] sm:$0xff] }
 0x60a   : > { %v2330_v61 = vpop.f32.mrf.mxu1 }
 0x60b   : > { %v2331_v4 = vadd.f32 %v2896_v60, %v2330_v61 }
 0x60d   : > { %v2335_v7 = vadd.f32 %v2949_v59, %v2331_v4  ;;  %v2451_v4 = vld [vmem:[%s3129_s27 + $0x20] sm:$0xff]  ;;  %v2452_v59 = vld [vmem:[%s3129_s27 + $0x28] sm:$0xff] }
 0x60f   : > { %v2339_v41 = vsel %vm834_vm9, %v2335_v7, 0.0 }
 0x610   : > { %2340 = vadd.xlane.f32.xlu0 %v2339_v41  ;;  %v2457_v41 = vpack.c.bf16 %v2452_v59, %v2451_v4 }
 0x612   : > { %v2332_v9 = vpop.f32.mrf.mxu1 }
 0x613   : > { %v2333_v53 = vadd.f32 %v2896_v60, %v2332_v9  ;;  %v2454_v60 = vld [vmem:[%s3129_s27 + $0x38] sm:$0xff]  ;;  %v2449_v9 = vld [vmem:[%s3129_s27 + $0x10] sm:$0xff] }
 0x614   : > { %v2458_v61 = vpack.c.bf16 %v2454_v60, %v2453_v58 }
 0x615   : > { %v2336_v11 = vadd.f32 %v2950_v22, %v2333_v53  ;;  %v2450_v53 = vld [vmem:[%s3129_s27 + $0x18] sm:$0xff]  ;;  %s3809_s27 = sld [smem:[#allocation13_spill]] (!%p2791_p5) }
 0x616   : > { %2471 = vmatpush.bf16.msra.mxu3 %v2458_v61 }
 0x617   : > { %v2342_v5 = vsel %vm834_vm9, %v2336_v11, 0.0 }
 0x618   : > { %2343 = vadd.xlane.f32.xlu2 %v2342_v5 }
 0x61a   : > { %2472 = vmatpush.bf16.msra.mxu3 %v2457_v41  ;;  %v2901_v41 = vld [vmem:[%s729_s20] ss:$0 sm:$0xff]  ;;  %s3807_s20 = sld [smem:[#allocation11_spill]] (!%p2791_p5) }
 0x61b   : > { %s3810_s0 = smov (!%p2791_p5), %s3809_s27 }
 0x683   : > { %v2341_v20 = vpop.xlane.xlu0 %2340 }
 0x684   : > { %v2352_v25 = vmul.f32 %v3675_v19, %v2341_v20 }
 0x686   : > { %v2354_v27 = vsub.f32 %v2335_v7, %v2352_v25  ;;  %v2899_v7 = vld [vmem:[%s718_s6] ss:$0 sm:$0xff] }
 0x688   : > { %v2356_v28 = vmul.f32 %v2354_v27, %v2354_v27 }
 0x68a   : > { %v2358_v57 = vsel %vm834_vm9, %v2356_v28, 0.0 }
 0x68b   : > { %v2344_v55 = vpop.xlane.xlu2 %2343  ;;  %2359 = vadd.xlane.f32.xlu1 %v2358_v57 }
 0x68c   : > { %v2353_v29 = vmul.f32 %v3675_v19, %v2344_v55 }
 0x68e   : > { %v2355_v30 = vsub.f32 %v2336_v11, %v2353_v29  ;;  %v2456_v11 = vpack.c.bf16 %v2450_v53, %v2449_v9  ;;  %v2902_v53 = vld [vmem:[%s732_s16] ss:$0 sm:$0xff] }
 0x690   : > { %v2357_v21 = vmul.f32 %v2355_v30, %v2355_v30  ;;  %2473 = vmatpush.bf16.msra.mxu3 %v2456_v11 }
 0x692   : > { %v2361_v13 = vsel %vm834_vm9, %v2357_v21, 0.0 }
 0x693   : > { %2362 = vadd.xlane.f32.xlu0 %v2361_v13 }
 0x694   : > { %2474 = vmatpush.bf16.msra.mxu3 %v2455_v14 }
 0x6fe   : > { %v2360_v32 = vpop.xlane.xlu1 %2359 }
 0x6ff   : > { %v2364_v33 = vmul.f32 %v2360_v32, %v3675_v19 }
 0x701   : > { %v2366_v34 = vadd.f32 1e-12, %v2364_v33 }
 0x703   : > { %2937 = vrsqrt.f32 %v2366_v34  ;;  %vm2374_vm1 = vweird.f32 %v2366_v34 }
 0x706   : > { %v2363_v24 = vpop.xlane.xlu0 %2362 }
 0x707   : > { %v2365_v38 = vmul.f32 %v2363_v24, %v3675_v19 }
 0x709   : > { %v2938_v31 = vpop.eup %2937  ;;  %v2367_v63 = vadd.f32 1e-12, %v2365_v38 }
 0x70a   : > { %v2369_v40 = vmul.f32 %v2938_v31, %v2366_v34  ;;  %vm2375_vm0 = vweird.f32 %v2938_v31 }
 0x70b   : > { %2939 = vrsqrt.f32 %v2367_v63  ;;  %vm2376_vm2 = vmor %vm2374_vm1, %vm2375_vm0  ;;  %vm2384_vm4 = vweird.f32 %v2367_v63 }
 0x70c   : > { %v2370_v16 = vmul.f32 %v2938_v31, %v2369_v40 }
 0x70e   : > { %v2371_v26 = vmul.f32 0.5, %v2370_v16 }
 0x710   : > { %v2372_v23 = vsub.f32 1.5, %v2371_v26 }
 0x711   : > { %v2940_v8 = vpop.eup %2939 }
 0x712   : > { %v2373_v39 = vmul.f32 %v2938_v31, %v2372_v23  ;;  %v2379_v2 = vmul.f32 %v2940_v8, %v2367_v63  ;;  %vm2385_vm3 = vweird.f32 %v2940_v8 }
 0x713   : > { %vm2386_vm5 = vmor %vm2384_vm4, %vm2385_vm3 }
 0x714   : > { %v2380_v42 = vmul.f32 %v2940_v8, %v2379_v2  ;;  %v2377_v43 = vsel %vm2376_vm2, %v2938_v31, %v2373_v39 }
 0x715   : > { %v2388_v47 = vmul.f32 %v2377_v43, %v2354_v27 }
 0x716   : > { %v2381_v44 = vmul.f32 0.5, %v2380_v42 }
 0x717   : > { %v2393_v51 = vmul.f32 %v2897_v46, %v2388_v47 }
 0x718   : > { %v2382_v45 = vsub.f32 1.5, %v2381_v44 }
 0x719   : > { %v2398_v1 = vadd.f32 %v2898_v50, %v2393_v51 }
 0x71a   : > { %v2383_v48 = vmul.f32 %v2940_v8, %v2382_v45 }
 0x71c   : > { %v2387_v49 = vsel %vm2386_vm5, %v2940_v8, %v2383_v48 }
 0x71d   : > { %v2389_v52 = vmul.f32 %v2387_v49, %v2355_v30 }
 0x71f   : > { %v2394_v0 = vmul.f32 %v2897_v46, %v2389_v52 }
 0x721   : > { %v2399_v56 = vadd.f32 %v2898_v50, %v2394_v0 }
 0x723   : > { %v2400_v54 = vpack.c.bf16 %v2399_v56, %v2398_v1 }
 0x725   : > { %2789 = vmatmul.msk.bf16.vlgmr.msra.gmra.mxu2 %vm834_vm9, %v2400_v54 }
 0x7a8   : > { %v2423_v22 = vpop.f32.mrf.mxu2 }
 0x7a9   : > { %v2424_v5 = vadd.f32 %v2899_v7, %v2423_v22 }
 0x7ab   : > { %v2430_v17 = vmul.f32 0.044715, %v2424_v5  ;;  %v2428_v34 = vmul.f32 0.5, %v2424_v5 }
 0x7ad   : > { %v2432_v3 = vmul.f32 %v2430_v17, %v2424_v5 }
 0x7af   : > { %v2434_v18 = vmul.f32 %v2432_v3, %v2424_v5 }
 0x7b0   : > { %v2425_v20 = vpop.f32.mrf.mxu2 }
 0x7b1   : > { %v2436_v25 = vadd.f32 %v2434_v18, %v2424_v5  ;;  %v2426_v27 = vadd.f32 %v2899_v7, %v2425_v20 }
 0x7b3   : > { %v2431_v28 = vmul.f32 0.044715, %v2426_v27  ;;  %v2438_v57 = vmul.f32 0.7978846, %v2436_v25  ;;  %v2429_v62 = vmul.f32 0.5, %v2426_v27 }
 0x7b5   : > { %v2433_v55 = vmul.f32 %v2431_v28, %v2426_v27  ;;  %2941 = vtanh.f32 %v2438_v57 }
 0x7b7   : > { %v2435_v29 = vmul.f32 %v2433_v55, %v2426_v27 }
 0x7b9   : > { %v2437_v30 = vadd.f32 %v2435_v29, %v2426_v27 }
 0x7bb   : > { %v2439_v21 = vmul.f32 0.7978846, %v2437_v30  ;;  %v2942_v13 = vpop.eup %2941 }
 0x7bc   : > { %v2442_v32 = vadd.f32 1.0, %v2942_v13 }
 0x7bd   : > { %2943 = vtanh.f32 %v2439_v21 }
 0x7be   : > { %v2444_v36 = vmul.f32 %v2442_v32, %v2428_v34 }
 0x7c3   : > { %v2944_v33 = vpop.eup %2943 }
 0x7c4   : > { %v2443_v35 = vadd.f32 1.0, %v2944_v33 }
 0x7c6   : > { %v2445_v10 = vmul.f32 %v2443_v35, %v2429_v62 }
 0x7c8   : > { %v2446_v6 = vpack.c.bf16 %v2445_v10, %v2444_v36 }
 0x7ca   : > { %2790 = vmatmul.msk.bf16.vlgmr.msra.gmra.mxu3 %vm2463_vm6, %v2446_v6 }
 0x84d   : > { %v2476_v24 = vpop.f32.mrf.mxu3 }
 0x84e   : > { %v2477_v38 = vadd.f32 %v2900_v37, %v2476_v24 }
 0x850   : > { %v2481_v31 = vadd.f32 %v2477_v38, %v2398_v1 }
 0x852   : > { %v2485_v63 = vsel %vm834_vm9, %v2481_v31, 0.0 }
 0x853   : > { %2486 = vadd.xlane.f32.xlu2 %v2485_v63 }
 0x855   : > { %v2478_v40 = vpop.f32.mrf.mxu3 }
 0x856   : > { %v2479_v16 = vadd.f32 %v2900_v37, %v2478_v40 }
 0x858   : > { %v2482_v26 = vadd.f32 %v2479_v16, %v2399_v56 }
 0x85a   : > { %v2488_v23 = vsel %vm834_vm9, %v2482_v26, 0.0 }
 0x85b   : > { %2489 = vadd.xlane.f32.xlu0 %v2488_v23 }
 0x8c6   : > { %v2487_v8 = vpop.xlane.xlu2 %2486 }
 0x8c7   : > { %v2491_v39 = vmul.f32 %v2487_v8, %v3675_v19 }
 0x8c9   : > { %v2493_v2 = vsub.f32 %v2481_v31, %v2491_v39 }
 0x8cb   : > { %v2495_v42 = vmul.f32 %v2493_v2, %v2493_v2 }
 0x8cd   : > { %v2497_v43 = vsel %vm834_vm9, %v2495_v42, 0.0 }
 0x8ce   : > { %v2490_v44 = vpop.xlane.xlu0 %2489  ;;  %2498 = vadd.xlane.f32.xlu1 %v2497_v43 }
 0x8cf   : > { %v2492_v45 = vmul.f32 %v2490_v44, %v3675_v19 }
 0x8d1   : > { %v2494_v46 = vsub.f32 %v2482_v26, %v2492_v45 }
 0x8d3   : > { %v2496_v47 = vmul.f32 %v2494_v46, %v2494_v46 }
 0x8d5   : > { %v2500_v48 = vsel %vm834_vm9, %v2496_v47, 0.0 }
 0x8d6   : > { %2501 = vadd.xlane.f32.xlu2 %v2500_v48 }
 0x941   : > { %v2499_v49 = vpop.xlane.xlu1 %2498 }
 0x942   : > { %v2503_v50 = vmul.f32 %v2499_v49, %v3675_v19 }
 0x944   : > { %v2505_v51 = vadd.f32 1e-12, %v2503_v50 }
 0x946   : > { %2945 = vrsqrt.f32 %v2505_v51  ;;  %vm2513_vm8 = vweird.f32 %v2505_v51 }
 0x949   : > { %v2502_v52 = vpop.xlane.xlu2 %2501 }
 0x94a   : > { %v2504_v0 = vmul.f32 %v2502_v52, %v3675_v19 }
 0x94c   : > { %v2946_v1 = vpop.eup %2945  ;;  %v2506_v56 = vadd.f32 1e-12, %v2504_v0 }
 0x94d   : > { %v2508_v54 = vmul.f32 %v2946_v1, %v2505_v51  ;;  %vm2514_vm7 = vweird.f32 %v2946_v1 }
 0x94e   : > { %2947 = vrsqrt.f32 %v2506_v56  ;;  %vm2515_vm10 = vmor %vm2513_vm8, %vm2514_vm7  ;;  %vm2523_vm12 = vweird.f32 %v2506_v56 }
 0x94f   : > { %v2509_v58 = vmul.f32 %v2946_v1, %v2508_v54 }
 0x951   : > { %v2510_v60 = vmul.f32 0.5, %v2509_v58 }
 0x953   : > { %v2511_v61 = vsub.f32 1.5, %v2510_v60 }
 0x954   : > { %v2948_v4 = vpop.eup %2947 }
 0x955   : > { %v2512_v59 = vmul.f32 %v2946_v1, %v2511_v61  ;;  %v2518_v7 = vmul.f32 %v2948_v4, %v2506_v56  ;;  %vm2524_vm11 = vweird.f32 %v2948_v4 }
 0x956   : > { %vm2525_vm13 = vmor %vm2523_vm12, %vm2524_vm11 }
 0x957   : > { %v2516_v19 = vsel %vm2515_vm10, %v2946_v1, %v2512_v59  ;;  %v2519_v9 = vmul.f32 %v2948_v4, %v2518_v7 }
 0x958   : > { %v2527_v22 = vmul.f32 %v2516_v19, %v2493_v2 }
 0x959   : > { %v2520_v11 = vmul.f32 0.5, %v2519_v9 }
 0x95a   : > { %v2532_v5 = vmul.f32 %v2901_v41, %v2527_v22 }
 0x95b   : > { %v2521_v12 = vsub.f32 1.5, %v2520_v11 }
 0x95c   : > { %v2537_v15 = vadd.f32 %v2902_v53, %v2532_v5 }
 0x95d   : > { %v2522_v17 = vmul.f32 %v2948_v4, %v2521_v12 }
 0x95e   : > { %2539 = vst.msk [vmem:[#allocation2] sm:$0xff] %vm834_vm9, %v2537_v15 }
 0x95f   : > { %v2526_v14 = vsel %vm2525_vm13, %v2948_v4, %v2522_v17 }
 0x960   : > { %v2528_v3 = vmul.f32 %v2526_v14, %v2494_v46 }
 0x962   : > { %v2533_v18 = vmul.f32 %v2901_v41, %v2528_v3  ;;  %2544 = sbr.rel (%p2791_p5) target bundleno = 2575 (0xa0f), region = 100 }
 0x964   : > { %v2538_v20 = vadd.f32 %v2902_v53, %v2533_v18 }
 0x966   : > { %2540 = vst.msk [vmem:[#allocation2 + $0x8] sm:$0xff] %vm834_vm9, %v2538_v20 }
 0x967   : > { %v2548_v25 = vld [vmem:[%s3807_s20 + $0x18] sm:$0xff]  ;;  %v2547_v27 = vld [vmem:[%s3807_s20 + $0x10] sm:$0xff]  ;;  %v2546_v28 = vld [vmem:[%s3807_s20 + $0x8] sm:$0xff] }
 0x968   : > { %2571 = vmatpush.msra.mxu0 %v2548_v25  ;;  %2800 = vmatpush.msra.mxu1 %v2548_v25  ;;  %v2545_v57 = vld [vmem:[%s3807_s20] sm:$0xff] }
 0x969   : > { %v2951_v55 = vld [vmem:[%s3808_s2] ss:$0 sm:$0xff] }
 0x96a   : > { %2572 = vmatpush.msra.mxu0 %v2547_v27  ;;  %2801 = vmatpush.msra.mxu1 %v2547_v27 }
 0x96c   : > { %2573 = vmatpush.msra.mxu0 %v2546_v28  ;;  %2802 = vmatpush.msra.mxu1 %v2546_v28 }
 0x96e   : > { %2574 = vmatpush.msra.mxu0 %v2545_v57  ;;  %2803 = vmatpush.msra.mxu1 %v2545_v57 }
 0x96f   : > { %2792 = vmatmul.msk.f32.vlgmr.msra.gmra.mxu0 %vm834_vm9, %v2537_v15  ;;  %2793 = vmatmul.msk.f32.vlgmr.msra.gmra.mxu1 %vm834_vm9, %v2538_v20 }
 0x9ec   : > { %v2576_v29 = vpop.f32.mrf.mxu0  ;;  %v2579_v30 = vpop.f32.mrf.mxu1 }
 0x9ed   : > { %v2577_v21 = vadd.f32 %v2951_v55, %v2576_v29  ;;  %v2580_v13 = vadd.f32 %v2951_v55, %v2579_v30 }
 0x9ef   : > { %v2582_v32 = vsub.f32 0.0, %v2577_v21  ;;  %v2583_v33 = vsub.f32 0.0, %v2580_v13 }
 0x9f1   : > { %v2584_v34 = vmul.f32 1.442695, %v2582_v32  ;;  %v2586_v62 = vmul.f32 1.442695, %v2583_v33 }
 0x9f3   : > { %2952 = vpow2.f32 %v2584_v34 }
 0x9f4   : > { %2954 = vpow2.f32 %v2586_v62 }
 0x9f9   : > { %v2953_v35 = vpop.eup %2952 }
 0x9fa   : > { %v2955_v36 = vpop.eup %2954  ;;  %v2588_v10 = vadd.f32 1.0, %v2953_v35 }
 0x9fb   : > { %v2589_v6 = vadd.f32 1.0, %v2955_v36 }
 0x9fc   : > { %2956 = vrcp.f32 %v2588_v10  ;;  %v2601_v40 = vand.u32 2147483648, %v2588_v10  ;;  %v2599_v23 = vand.u32 2147483647, %v2588_v10  ;;  %vm2595_vm15 = vweird.f32 %v2588_v10 }
 0x9fd   : > { %2958 = vrcp.f32 %v2589_v6  ;;  %v2616_v8 = vand.u32 2147483648, %v2589_v6  ;;  %v2614_v2 = vand.u32 2147483647, %v2589_v6  ;;  %vm2610_vm1 = vweird.f32 %v2589_v6 }
 0x9fe   : > { %v2602_v43 = vor.u32 1.1754944e-38, %v2601_v40  ;;  %vm2600_vm2 = vcmp.eq.f32.partialorder %v2599_v23, 8.507059e+37 }
 0x9ff   : > { %v2617_v46 = vor.u32 1.1754944e-38, %v2616_v8  ;;  %vm2615_vm4 = vcmp.eq.f32.partialorder %v2614_v2, 8.507059e+37 }
 0xa02   : > { %v2957_v37 = vpop.eup %2956 }
 0xa03   : > { %v2959_v24 = vpop.eup %2958  ;;  %v2591_v38 = vmul.f32 %v2957_v37, %v2588_v10  ;;  %vm2596_vm9 = vweird.f32 %v2957_v37 }
 0xa04   : > { %v2606_v31 = vmul.f32 %v2959_v24, %v2589_v6  ;;  %vm2611_vm14 = vweird.f32 %v2959_v24  ;;  %vm2597_vm0 = vmor %vm2595_vm15, %vm2596_vm9 }
 0xa05   : > { %v2592_v63 = vsub.f32 1.0, %v2591_v38  ;;  %vm2612_vm3 = vmor %vm2610_vm1, %vm2611_vm14 }
 0xa06   : > { %v2607_v16 = vsub.f32 1.0, %v2606_v31 }
 0xa07   : > { %v2593_v26 = vmul.f32 %v2957_v37, %v2592_v63 }
 0xa08   : > { %v2608_v39 = vmul.f32 %v2959_v24, %v2607_v16 }
 0xa09   : > { %v2594_v42 = vadd.f32 %v2957_v37, %v2593_v26 }
 0xa0a   : > { %v2609_v44 = vadd.f32 %v2959_v24, %v2608_v39 }
 0xa0b   : > { %v2598_v45 = vsel %vm2597_vm0, %v2957_v37, %v2594_v42 }
 0xa0c   : > { %v2603_v47 = vsel %vm2600_vm2, %v2602_v43, %v2598_v45  ;;  %v2613_v48 = vsel %vm2612_vm3, %v2959_v24, %v2609_v44 }
 0xa0d   : > { %2620 = vst [vmem:[%s3809_s27] sm:$0xff] %v2603_v47  ;;  %v2618_v49 = vsel %vm2615_vm4, %v2617_v46, %v2613_v48 }
 0xa0e   : > { %2621 = vst [vmem:[%s3810_s0 + $0x8] sm:$0xff] %v2618_v49 }
 0xa0f PF: > { %s3811_s1 = sld [smem:[#allocation4_spill]] }
 0xa15   : > { %s28_s27 = sadd.s32 1, %s3811_s1  }
 0xa16   : > { %p25_p6 = scmp.ge.s32.totalorder %s28_s27, 4  }
 0xa18   :  { %27 = sbr.rel (!%p25_p6) target bundleno = 9 (0x9), region = 159 }

</bundles_post_ra>
